<compile_context>
chip_gen: v7x
topology: tpu7x:2x2x1
jax: 0.10.0
libtpu: 0.0.40
codegen_flags: <defaults>
</compile_context>

<pallas_src>
import functools

import jax
import jax.numpy as jnp
from jax.experimental import pallas as pl
from jax.experimental.pallas import tpu as pltpu

_VMEM_LIMIT = 32 * 1024 * 1024


# ----------------------------------------------------------------------------
# Pallas kernel 1: hoisted input projection for BOTH directions of one layer.
#   gates_x = x @ [W_ih_f | W_ih_b] + [b_f | b_b]     -> (S*B, 8H)
# One big MXU matmul (M = S*B, N = 8H) off the serial critical path.
# ----------------------------------------------------------------------------
def _input_proj_kernel(x_ref, w_ref, b_ref, gf_ref, gb_ref):
    g = (
        jnp.dot(x_ref[...], w_ref[...], preferred_element_type=jnp.float32)
        + b_ref[...]
    )
    g4 = gf_ref.shape[-1]           # 4H (lane-aligned split at 128 for H=32)
    gf_ref[...] = g[:, :g4]
    gb_ref[...] = g[:, g4:]


def input_projection(x, w_ih_cat, b_cat):
    """x: (S, B, D); w_ih_cat: (D, 8H) = [fwd | bwd]; b_cat: (1, 8H).
    Returns gates_x_fwd, gates_x_bwd, each (S, B, 4H)."""
    S, B, D = x.shape
    G8 = w_ih_cat.shape[1]
    G4 = G8 // 2
    x2 = x.reshape(S * B, D)        # contiguous reshape -> free

    gf, gb = pl.pallas_call(
        _input_proj_kernel,
        out_shape=(
            jax.ShapeDtypeStruct((S * B, G4), jnp.float32),
            jax.ShapeDtypeStruct((S * B, G4), jnp.float32),
        ),
        grid_spec=pltpu.PrefetchScalarGridSpec(
            num_scalar_prefetch=0,
            grid=(1,),
            in_specs=[
                pl.BlockSpec((S * B, D), lambda i: (0, 0)),
                pl.BlockSpec((D, G8), lambda i: (0, 0)),
                pl.BlockSpec((1, G8), lambda i: (0, 0)),
            ],
            out_specs=[
                pl.BlockSpec((S * B, G4), lambda i: (0, 0)),
                pl.BlockSpec((S * B, G4), lambda i: (0, 0)),
            ],
        ),
        compiler_params=pltpu.CompilerParams(
            dimension_semantics=("arbitrary",),
            vmem_limit_bytes=_VMEM_LIMIT,
        ),
    )(x2, w_ih_cat, b_cat)

    return gf.reshape(S, B, G4), gb.reshape(S, B, G4)


# ----------------------------------------------------------------------------
# Pallas kernel 2: fused bidirectional recurrence for one layer.
#   grid = (S,), time sequential ("arbitrary").
#   Backward direction reads its precomputed gates at time S-1-t via a reversed
#   index_map (no HBM flips) and writes its output to row S-1-t of the resident
#   (S, B, 2H) output slab. h/c for both directions live in VMEM scratch.
#   PyTorch gate order: i, f, g, o.
# ----------------------------------------------------------------------------
def _bidir_lstm_kernel(gxf_ref, gxb_ref, whh_ref, out_ref, hT_ref, h_sc, c_sc):
    t = pl.program_id(0)
    S = pl.num_programs(0)
    H = h_sc.shape[-1]

    @pl.when(t == 0)
    def _():
        h_sc[...] = jnp.zeros_like(h_sc)
        c_sc[...] = jnp.zeros_like(c_sc)

    # Only the recurrent projection stays on the serial path; the input
    # projection + bias were hoisted into `_input_proj_kernel`.
    gates_f = gxf_ref[0] + jnp.dot(
        h_sc[0], whh_ref[0], preferred_element_type=jnp.float32
    )
    gates_b = gxb_ref[0] + jnp.dot(
        h_sc[1], whh_ref[1], preferred_element_type=jnp.float32
    )

    def lstm_cell(gates, c_prev):
        i_g = jax.nn.sigmoid(gates[:, 0 * H:1 * H])
        f_g = jax.nn.sigmoid(gates[:, 1 * H:2 * H])
        g_g = jnp.tanh(gates[:, 2 * H:3 * H])
        o_g = jax.nn.sigmoid(gates[:, 3 * H:4 * H])
        c_new = f_g * c_prev + i_g * g_g
        h_new = o_g * jnp.tanh(c_new)
        return h_new, c_new

    h_f, c_f = lstm_cell(gates_f, c_sc[0])
    h_b, c_b = lstm_cell(gates_b, c_sc[1])

    h_sc[0] = h_f
    c_sc[0] = c_f
    h_sc[1] = h_b
    c_sc[1] = c_b

    # Resident output slab: forward result belongs at time t, backward at S-1-t.
    out_ref[pl.ds(t, 1), :, 0:H] = h_f[None]
    out_ref[pl.ds(S - 1 - t, 1), :, H:2 * H] = h_b[None]

    # Final hidden states (both directions finish at grid step S-1).
    @pl.when(t == S - 1)
    def _():
        hT_ref[:, 0:H] = h_f
        hT_ref[:, H:2 * H] = h_b


def bidir_lstm_layer(gx_f, gx_b, w_hh):
    """gx_f / gx_b: (S, B, 4H) precomputed input gates (fwd / bwd);
    w_hh: (2, H, 4H) = stacked [fwd, bwd] recurrent weights.
    Returns (outputs (S, B, 2H), final hidden (B, 2H))."""
    S, B, G4 = gx_f.shape
    H = w_hh.shape[1]

    grid_spec = pltpu.PrefetchScalarGridSpec(
        num_scalar_prefetch=0,
        grid=(S,),
        in_specs=[
            pl.BlockSpec((1, B, G4), lambda t: (t, 0, 0)),           # fwd gates_x
            pl.BlockSpec((1, B, G4), lambda t: (S - 1 - t, 0, 0)),   # bwd gates_x (reversed access)
            pl.BlockSpec((2, H, G4), lambda t: (0, 0, 0)),           # W_hh (resident)
        ],
        out_specs=[
            pl.BlockSpec((S, B, 2 * H), lambda t: (0, 0, 0)),        # full output resident
            pl.BlockSpec((B, 2 * H), lambda t: (0, 0)),              # final hidden resident
        ],
        scratch_shapes=[
            pltpu.VMEM((2, B, H), jnp.float32),  # h carry (fwd, bwd)
            pltpu.VMEM((2, B, H), jnp.float32),  # c carry (fwd, bwd)
        ],
    )

    out, h_T = pl.pallas_call(
        _bidir_lstm_kernel,
        out_shape=(
            jax.ShapeDtypeStruct((S, B, 2 * H), jnp.float32),
            jax.ShapeDtypeStruct((B, 2 * H), jnp.float32),
        ),
        grid_spec=grid_spec,
        compiler_params=pltpu.CompilerParams(
            dimension_semantics=("arbitrary",),  # sequential recurrence over time
            vmem_limit_bytes=_VMEM_LIMIT,
        ),
    )(gx_f, gx_b, w_hh)
    return out, h_T


# ----------------------------------------------------------------------------
# Full forward pass (mirrors RNN.forward, eval mode -> dropout = identity)
# ----------------------------------------------------------------------------
def rnn_forward(params, text):
    # Embedding lookup (glue, plain JAX gather).
    x = params["embedding"][text]  # (S, B, E)

    h_T = None
    for lp in params["lstm"]:
        gx_f, gx_b = input_projection(x, lp["w_ih_cat"], lp["b_cat"])
        x, h_T = bidir_lstm_layer(gx_f, gx_b, lp["w_hh"])
        # TODO(synk): inter-layer dropout only applies in training mode; omitted (eval).

    # hidden = cat(hidden[-2], hidden[-1]) == h_T; final Linear is tiny (B,2H)@(2H,O)
    # -> plain JAX per perf review (a standalone pallas_call costs more than the matmul).
    return h_T @ params["fc_w"] + params["fc_b"]


# ----------------------------------------------------------------------------
# Deterministic parameter construction (PyTorch-style LSTM params, pre-fused:
#   w_ih_cat (D, 8H) = [W_ih_f^T | W_ih_b^T],  b_cat (1, 8H) = [b_f | b_b],
#   w_hh (2, H, 4H)  = stack(W_hh_f^T, W_hh_b^T),  b_* = b_ih + b_hh)
# ----------------------------------------------------------------------------
def init_params(key, vocab_size, emb_dim, hidden_dim, output_dim, n_layers, pad_idx):
    keys = jax.random.split(key, 64)
    ki = iter(range(64))

    def u(k, shape, scale):
        return jax.random.uniform(keys[k], shape, jnp.float32, -scale, scale)

    emb = jax.random.normal(keys[next(ki)], (vocab_size, emb_dim), jnp.float32)
    emb = emb.at[pad_idx].set(0.0)  # padding_idx row zeroed

    k_lstm = 1.0 / jnp.sqrt(hidden_dim)
    lstm_params = []
    for layer in range(n_layers):
        d_in = emb_dim if layer == 0 else 2 * hidden_dim
        wih_t, whh_t, biases = [], [], []
        for _tag in ("f", "b"):
            w_ih = u(next(ki), (4 * hidden_dim, d_in), k_lstm)
            w_hh = u(next(ki), (4 * hidden_dim, hidden_dim), k_lstm)
            b_ih = u(next(ki), (4 * hidden_dim,), k_lstm)
            b_hh = u(next(ki), (4 * hidden_dim,), k_lstm)
            wih_t.append(w_ih.T)              # (d_in, 4H)
            whh_t.append(w_hh.T)              # (H, 4H)
            biases.append(b_ih + b_hh)        # (4H,)
        lstm_params.append({
            "w_ih_cat": jnp.concatenate(wih_t, axis=1),           # (d_in, 8H)
            "b_cat": jnp.concatenate(biases, axis=0).reshape(1, -1),  # (1, 8H)
            "w_hh": jnp.stack(whh_t, axis=0),                     # (2, H, 4H)
        })

    k_fc = 1.0 / jnp.sqrt(2 * hidden_dim)
    fc_w = u(next(ki), (output_dim, 2 * hidden_dim), k_fc)
    fc_b = u(next(ki), (output_dim,), k_fc)

    return {
        "embedding": emb,
        "lstm": lstm_params,
        "fc_w": fc_w.T,                 # (2H, O)
        "fc_b": fc_b.reshape(1, -1),    # (1, O)
    }


# ----------------------------------------------------------------------------
# Pure-JAX reference (lax.scan) for a correctness sanity check
# ----------------------------------------------------------------------------
def _ref_lstm_dir(x, w_ih_t, w_hh_t, bias):
    H = w_hh_t.shape[0]
    B = x.shape[1]

    def step(carry, x_t):
        h, c = carry
        g = x_t @ w_ih_t + h @ w_hh_t + bias
        i = jax.nn.sigmoid(g[:, 0 * H:1 * H])
        f = jax.nn.sigmoid(g[:, 1 * H:2 * H])
        gg = jnp.tanh(g[:, 2 * H:3 * H])
        o = jax.nn.sigmoid(g[:, 3 * H:4 * H])
        c = f * c + i * gg
        h = o * jnp.tanh(c)
        return (h, c), h

    init = (jnp.zeros((B, H), jnp.float32), jnp.zeros((B, H), jnp.float32))
    (h_T, _), outs = jax.lax.scan(step, init, x)
    return outs, h_T


def rnn_forward_ref(params, text):
    x = params["embedding"][text]
    h_f = h_b = None
    for lp in params["lstm"]:
        G4 = lp["w_hh"].shape[2]
        wih_f, wih_b = lp["w_ih_cat"][:, :G4], lp["w_ih_cat"][:, G4:]
        b_f, b_b = lp["b_cat"][:, :G4], lp["b_cat"][:, G4:]
        out_f, h_f = _ref_lstm_dir(x, wih_f, lp["w_hh"][0], b_f)
        out_b_rev, h_b = _ref_lstm_dir(x[::-1], wih_b, lp["w_hh"][1], b_b)
        x = jnp.concatenate([out_f, out_b_rev[::-1]], axis=-1)
    hidden = jnp.concatenate([h_f, h_b], axis=1)
    return hidden @ params["fc_w"] + params["fc_b"]


if __name__ == "__main__":
    VOCAB = 50
    EMB = 32
    HIDDEN = 32
    OUT = 3
    N_LAYERS = 2
    PAD_IDX = 0
    SEQ = 8
    BATCH = 2

    key = jax.random.PRNGKey(0)
    k_param, k_text = jax.random.split(key)

    params = init_params(k_param, VOCAB, EMB, HIDDEN, OUT, N_LAYERS, PAD_IDX)
    text = jax.random.randint(k_text, (SEQ, BATCH), 0, VOCAB, dtype=jnp.int32)

    fwd = jax.jit(functools.partial(rnn_forward, params))
    logits = fwd(text)
    jax.block_until_ready(logits)

    ref = rnn_forward_ref(params, text)
    assert logits.shape == (BATCH, OUT)
    assert jnp.allclose(logits, ref, atol=1e-4), "Pallas output mismatch vs JAX reference"

    print("KERNEL_OK")
</pallas_src>

<mosaic_0001>
module attributes {stable_mosaic.version = 11 : i64} {
  func.func @_input_proj_kernel(%arg0: i32, %arg1: memref<16x32xf32, #tpu.memory_space<vmem>>, %arg2: memref<32x256xf32, #tpu.memory_space<vmem>>, %arg3: memref<1x256xf32, #tpu.memory_space<vmem>>, %arg4: memref<16x128xf32, #tpu.memory_space<vmem>>, %arg5: memref<16x128xf32, #tpu.memory_space<vmem>>) attributes {dimension_semantics = [#tpu.dimension_semantics<arbitrary>], iteration_bounds = array<i64: 1>, scalar_prefetch = 0 : i64, scratch_operands = 0 : i64, tpu.core_type = #tpu.core_type<tc>, window_params = [{pipeline_mode = #tpu.pipeline_mode<synchronous>, transform_indices = @transform_0, window_bounds = array<i64: 16, 32>}, {pipeline_mode = #tpu.pipeline_mode<synchronous>, transform_indices = @transform_1, window_bounds = array<i64: 32, 256>}, {pipeline_mode = #tpu.pipeline_mode<synchronous>, transform_indices = @transform_2, window_bounds = array<i64: 1, 256>}, {pipeline_mode = #tpu.pipeline_mode<synchronous>, transform_indices = @transform_3, window_bounds = array<i64: 16, 128>}, {pipeline_mode = #tpu.pipeline_mode<synchronous>, transform_indices = @transform_4, window_bounds = array<i64: 16, 128>}]} {
    %c0 = arith.constant 0 : index
    %c0_0 = arith.constant 0 : index
    %0 = vector.load %arg1[%c0, %c0_0] : memref<16x32xf32, #tpu.memory_space<vmem>>, vector<16x32xf32>
    %c0_1 = arith.constant 0 : index
    %c0_2 = arith.constant 0 : index
    %1 = vector.load %arg2[%c0_1, %c0_2] : memref<32x256xf32, #tpu.memory_space<vmem>>, vector<32x256xf32>
    %cst = arith.constant dense<0.000000e+00> : vector<16x256xf32>
    %2 = tpu.matmul %0, %1, %cst {dimension_numbers = #tpu.dot_dimension_numbers<[1], [0], [0], [1], [0, 0, 1, 1], [], []>} : vector<16x32xf32>, vector<32x256xf32>, vector<16x256xf32> -> vector<16x256xf32>
    %c0_3 = arith.constant 0 : index
    %c0_4 = arith.constant 0 : index
    %3 = vector.load %arg3[%c0_3, %c0_4] : memref<1x256xf32, #tpu.memory_space<vmem>>, vector<1x256xf32>
    %4 = vector.broadcast %3 : vector<1x256xf32> to vector<16x256xf32>
    %5 = arith.addf %2, %4 : vector<16x256xf32>
    %6 = vector.extract_strided_slice %5 {offsets = [0, 0], sizes = [16, 128], strides = [1, 1]} : vector<16x256xf32> to vector<16x128xf32>
    %c0_5 = arith.constant 0 : index
    %c0_6 = arith.constant 0 : index
    %7 = vector.load %arg4[%c0_5, %c0_6] : memref<16x128xf32, #tpu.memory_space<vmem>>, vector<16x128xf32>
    tpu.vector_store %arg4[%c0_5, %c0_6], %6 {strides = array<i32>} : memref<16x128xf32, #tpu.memory_space<vmem>>, vector<16x128xf32>,
    %8 = vector.extract_strided_slice %5 {offsets = [0, 128], sizes = [16, 128], strides = [1, 1]} : vector<16x256xf32> to vector<16x128xf32>
    %c0_7 = arith.constant 0 : index
    %c0_8 = arith.constant 0 : index
    %9 = vector.load %arg5[%c0_7, %c0_8] : memref<16x128xf32, #tpu.memory_space<vmem>>, vector<16x128xf32>
    tpu.vector_store %arg5[%c0_7, %c0_8], %8 {strides = array<i32>} : memref<16x128xf32, #tpu.memory_space<vmem>>, vector<16x128xf32>,
    return
  }
  func.func @transform_0(%arg0: i32) -> (i32, i32) {
    %c0_i32 = arith.constant 0 : i32
    %c0_i32_0 = arith.constant 0 : i32
    %c0_i32_1 = arith.constant 0 : i32
    return %c0_i32, %c0_i32_0 : i32, i32
  }
  func.func @transform_1(%arg0: i32) -> (i32, i32) {
    %c0_i32 = arith.constant 0 : i32
    %c0_i32_0 = arith.constant 0 : i32
    %c0_i32_1 = arith.constant 0 : i32
    return %c0_i32, %c0_i32_0 : i32, i32
  }
  func.func @transform_2(%arg0: i32) -> (i32, i32) {
    %c0_i32 = arith.constant 0 : i32
    %c0_i32_0 = arith.constant 0 : i32
    %c0_i32_1 = arith.constant 0 : i32
    return %c0_i32, %c0_i32_0 : i32, i32
  }
  func.func @transform_3(%arg0: i32) -> (i32, i32) {
    %c0_i32 = arith.constant 0 : i32
    %c0_i32_0 = arith.constant 0 : i32
    %c0_i32_1 = arith.constant 0 : i32
    return %c0_i32, %c0_i32_0 : i32, i32
  }
  func.func @transform_4(%arg0: i32) -> (i32, i32) {
    %c0_i32 = arith.constant 0 : i32
    %c0_i32_0 = arith.constant 0 : i32
    %c0_i32_1 = arith.constant 0 : i32
    return %c0_i32, %c0_i32_0 : i32, i32
  }
}

module attributes {stable_mosaic.version = 11 : i64} {
  func.func @_input_proj_kernel(%arg0: i32, %arg1: memref<16x64xf32, #tpu.memory_space<vmem>>, %arg2: memref<64x256xf32, #tpu.memory_space<vmem>>, %arg3: memref<1x256xf32, #tpu.memory_space<vmem>>, %arg4: memref<16x128xf32, #tpu.memory_space<vmem>>, %arg5: memref<16x128xf32, #tpu.memory_space<vmem>>) attributes {dimension_semantics = [#tpu.dimension_semantics<arbitrary>], iteration_bounds = array<i64: 1>, scalar_prefetch = 0 : i64, scratch_operands = 0 : i64, tpu.core_type = #tpu.core_type<tc>, window_params = [{pipeline_mode = #tpu.pipeline_mode<synchronous>, transform_indices = @transform_0, window_bounds = array<i64: 16, 64>}, {pipeline_mode = #tpu.pipeline_mode<synchronous>, transform_indices = @transform_1, window_bounds = array<i64: 64, 256>}, {pipeline_mode = #tpu.pipeline_mode<synchronous>, transform_indices = @transform_2, window_bounds = array<i64: 1, 256>}, {pipeline_mode = #tpu.pipeline_mode<synchronous>, transform_indices = @transform_3, window_bounds = array<i64: 16, 128>}, {pipeline_mode = #tpu.pipeline_mode<synchronous>, transform_indices = @transform_4, window_bounds = array<i64: 16, 128>}]} {
    %c0 = arith.constant 0 : index
    %c0_0 = arith.constant 0 : index
    %0 = vector.load %arg1[%c0, %c0_0] : memref<16x64xf32, #tpu.memory_space<vmem>>, vector<16x64xf32>
    %c0_1 = arith.constant 0 : index
    %c0_2 = arith.constant 0 : index
    %1 = vector.load %arg2[%c0_1, %c0_2] : memref<64x256xf32, #tpu.memory_space<vmem>>, vector<64x256xf32>
    %cst = arith.constant dense<0.000000e+00> : vector<16x256xf32>
    %2 = tpu.matmul %0, %1, %cst {dimension_numbers = #tpu.dot_dimension_numbers<[1], [0], [0], [1], [0, 0, 1, 1], [], []>} : vector<16x64xf32>, vector<64x256xf32>, vector<16x256xf32> -> vector<16x256xf32>
    %c0_3 = arith.constant 0 : index
    %c0_4 = arith.constant 0 : index
    %3 = vector.load %arg3[%c0_3, %c0_4] : memref<1x256xf32, #tpu.memory_space<vmem>>, vector<1x256xf32>
    %4 = vector.broadcast %3 : vector<1x256xf32> to vector<16x256xf32>
    %5 = arith.addf %2, %4 : vector<16x256xf32>
    %6 = vector.extract_strided_slice %5 {offsets = [0, 0], sizes = [16, 128], strides = [1, 1]} : vector<16x256xf32> to vector<16x128xf32>
    %c0_5 = arith.constant 0 : index
    %c0_6 = arith.constant 0 : index
    %7 = vector.load %arg4[%c0_5, %c0_6] : memref<16x128xf32, #tpu.memory_space<vmem>>, vector<16x128xf32>
    tpu.vector_store %arg4[%c0_5, %c0_6], %6 {strides = array<i32>} : memref<16x128xf32, #tpu.memory_space<vmem>>, vector<16x128xf32>,
    %8 = vector.extract_strided_slice %5 {offsets = [0, 128], sizes = [16, 128], strides = [1, 1]} : vector<16x256xf32> to vector<16x128xf32>
    %c0_7 = arith.constant 0 : index
    %c0_8 = arith.constant 0 : index
    %9 = vector.load %arg5[%c0_7, %c0_8] : memref<16x128xf32, #tpu.memory_space<vmem>>, vector<16x128xf32>
    tpu.vector_store %arg5[%c0_7, %c0_8], %8 {strides = array<i32>} : memref<16x128xf32, #tpu.memory_space<vmem>>, vector<16x128xf32>,
    return
  }
  func.func @transform_0(%arg0: i32) -> (i32, i32) {
    %c0_i32 = arith.constant 0 : i32
    %c0_i32_0 = arith.constant 0 : i32
    %c0_i32_1 = arith.constant 0 : i32
    return %c0_i32, %c0_i32_0 : i32, i32
  }
  func.func @transform_1(%arg0: i32) -> (i32, i32) {
    %c0_i32 = arith.constant 0 : i32
    %c0_i32_0 = arith.constant 0 : i32
    %c0_i32_1 = arith.constant 0 : i32
    return %c0_i32, %c0_i32_0 : i32, i32
  }
  func.func @transform_2(%arg0: i32) -> (i32, i32) {
    %c0_i32 = arith.constant 0 : i32
    %c0_i32_0 = arith.constant 0 : i32
    %c0_i32_1 = arith.constant 0 : i32
    return %c0_i32, %c0_i32_0 : i32, i32
  }
  func.func @transform_3(%arg0: i32) -> (i32, i32) {
    %c0_i32 = arith.constant 0 : i32
    %c0_i32_0 = arith.constant 0 : i32
    %c0_i32_1 = arith.constant 0 : i32
    return %c0_i32, %c0_i32_0 : i32, i32
  }
  func.func @transform_4(%arg0: i32) -> (i32, i32) {
    %c0_i32 = arith.constant 0 : i32
    %c0_i32_0 = arith.constant 0 : i32
    %c0_i32_1 = arith.constant 0 : i32
    return %c0_i32, %c0_i32_0 : i32, i32
  }
}

module attributes {stable_mosaic.version = 11 : i64} {
  func.func @_bidir_lstm_kernel(%arg0: i32, %arg1: memref<1x2x128xf32, #tpu.memory_space<vmem>>, %arg2: memref<1x2x128xf32, #tpu.memory_space<vmem>>, %arg3: memref<2x32x128xf32, #tpu.memory_space<vmem>>, %arg4: memref<8x2x64xf32, #tpu.memory_space<vmem>>, %arg5: memref<2x64xf32, #tpu.memory_space<vmem>>, %arg6: memref<2x2x32xf32, #tpu.memory_space<vmem>>, %arg7: memref<2x2x32xf32, #tpu.memory_space<vmem>>) attributes {dimension_semantics = [#tpu.dimension_semantics<arbitrary>], iteration_bounds = array<i64: 8>, scalar_prefetch = 0 : i64, scratch_operands = 2 : i64, tpu.core_type = #tpu.core_type<tc>, window_params = [{transform_indices = @transform_0, window_bounds = array<i64: 1, 2, 128>}, {transform_indices = @transform_1, window_bounds = array<i64: 1, 2, 128>}, {pipeline_mode = #tpu.pipeline_mode<synchronous>, transform_indices = @transform_2, window_bounds = array<i64: 2, 32, 128>}, {pipeline_mode = #tpu.pipeline_mode<synchronous>, transform_indices = @transform_3, window_bounds = array<i64: 8, 2, 64>}, {pipeline_mode = #tpu.pipeline_mode<synchronous>, transform_indices = @transform_4, window_bounds = array<i64: 2, 64>}]} {
    %c0_i32 = arith.constant 0 : i32
    %0 = arith.cmpi eq, %arg0, %c0_i32 : i32
    %1 = arith.extui %0 : i1 to i32
    %c0_i32_0 = arith.constant 0 : i32
    %2 = arith.cmpi ne, %1, %c0_i32_0 : i32
    scf.if %2 {
      %cst_47 = arith.constant 0.000000e+00 : f32
      %95 = vector.broadcast %cst_47 : f32 to vector<2x2x32xf32>
      %c0_48 = arith.constant 0 : index
      %c0_49 = arith.constant 0 : index
      %c0_50 = arith.constant 0 : index
      %96 = vector.load %arg6[%c0_48, %c0_49, %c0_50] : memref<2x2x32xf32, #tpu.memory_space<vmem>>, vector<2x2x32xf32>
      tpu.vector_store %arg6[%c0_48, %c0_49, %c0_50], %95 {strides = array<i32>} : memref<2x2x32xf32, #tpu.memory_space<vmem>>, vector<2x2x32xf32>,
      %cst_51 = arith.constant 0.000000e+00 : f32
      %97 = vector.broadcast %cst_51 : f32 to vector<2x2x32xf32>
      %c0_52 = arith.constant 0 : index
      %c0_53 = arith.constant 0 : index
      %c0_54 = arith.constant 0 : index
      %98 = vector.load %arg7[%c0_52, %c0_53, %c0_54] : memref<2x2x32xf32, #tpu.memory_space<vmem>>, vector<2x2x32xf32>
      tpu.vector_store %arg7[%c0_52, %c0_53, %c0_54], %97 {strides = array<i32>} : memref<2x2x32xf32, #tpu.memory_space<vmem>>, vector<2x2x32xf32>,
    } else {
    }
    %c0 = arith.constant 0 : index
    %c0_1 = arith.constant 0 : index
    %c0_2 = arith.constant 0 : index
    %3 = vector.load %arg1[%c0, %c0_1, %c0_2] : memref<1x2x128xf32, #tpu.memory_space<vmem>>, vector<1x2x128xf32>
    %4 = vector.shape_cast %3 : vector<1x2x128xf32> to vector<2x128xf32>
    %c0_3 = arith.constant 0 : index
    %c0_4 = arith.constant 0 : index
    %c0_5 = arith.constant 0 : index
    %5 = vector.load %arg6[%c0_3, %c0_4, %c0_5] : memref<2x2x32xf32, #tpu.memory_space<vmem>>, vector<1x2x32xf32>
    %6 = vector.shape_cast %5 : vector<1x2x32xf32> to vector<2x32xf32>
    %c0_6 = arith.constant 0 : index
    %c0_7 = arith.constant 0 : index
    %c0_8 = arith.constant 0 : index
    %7 = vector.load %arg3[%c0_6, %c0_7, %c0_8] : memref<2x32x128xf32, #tpu.memory_space<vmem>>, vector<1x32x128xf32>
    %8 = vector.shape_cast %7 : vector<1x32x128xf32> to vector<32x128xf32>
    %cst = arith.constant dense<0.000000e+00> : vector<2x128xf32>
    %9 = tpu.matmul %6, %8, %cst {dimension_numbers = #tpu.dot_dimension_numbers<[1], [0], [0], [1], [0, 0, 1, 1], [], []>} : vector<2x32xf32>, vector<32x128xf32>, vector<2x128xf32> -> vector<2x128xf32>
    %10 = arith.addf %4, %9 : vector<2x128xf32>
    %c0_9 = arith.constant 0 : index
    %c0_10 = arith.constant 0 : index
    %c0_11 = arith.constant 0 : index
    %11 = vector.load %arg2[%c0_9, %c0_10, %c0_11] : memref<1x2x128xf32, #tpu.memory_space<vmem>>, vector<1x2x128xf32>
    %12 = vector.shape_cast %11 : vector<1x2x128xf32> to vector<2x128xf32>
    %c1 = arith.constant 1 : index
    %c0_12 = arith.constant 0 : index
    %c0_13 = arith.constant 0 : index
    %13 = vector.load %arg6[%c1, %c0_12, %c0_13] : memref<2x2x32xf32, #tpu.memory_space<vmem>>, vector<1x2x32xf32>
    %14 = vector.shape_cast %13 : vector<1x2x32xf32> to vector<2x32xf32>
    %c1_14 = arith.constant 1 : index
    %c0_15 = arith.constant 0 : index
    %c0_16 = arith.constant 0 : index
    %15 = vector.load %arg3[%c1_14, %c0_15, %c0_16] : memref<2x32x128xf32, #tpu.memory_space<vmem>>, vector<1x32x128xf32>
    %16 = vector.shape_cast %15 : vector<1x32x128xf32> to vector<32x128xf32>
    %cst_17 = arith.constant dense<0.000000e+00> : vector<2x128xf32>
    %17 = tpu.matmul %14, %16, %cst_17 {dimension_numbers = #tpu.dot_dimension_numbers<[1], [0], [0], [1], [0, 0, 1, 1], [], []>} : vector<2x32xf32>, vector<32x128xf32>, vector<2x128xf32> -> vector<2x128xf32>
    %18 = arith.addf %12, %17 : vector<2x128xf32>
    %c0_18 = arith.constant 0 : index
    %c0_19 = arith.constant 0 : index
    %c0_20 = arith.constant 0 : index
    %19 = vector.load %arg7[%c0_18, %c0_19, %c0_20] : memref<2x2x32xf32, #tpu.memory_space<vmem>>, vector<1x2x32xf32>
    %20 = vector.shape_cast %19 : vector<1x2x32xf32> to vector<2x32xf32>
    %21 = vector.extract_strided_slice %10 {offsets = [0, 0], sizes = [2, 32], strides = [1, 1]} : vector<2x128xf32> to vector<2x32xf32>
    %22 = arith.negf %21 : vector<2x32xf32>
    %23 = math.exp %22 : vector<2x32xf32>
    %cst_21 = arith.constant 1.000000e+00 : f32
    %24 = vector.broadcast %cst_21 : f32 to vector<2x32xf32>
    %25 = arith.addf %24, %23 : vector<2x32xf32>
    %26 = arith.divf %24, %25 : vector<2x32xf32>
    %27 = vector.extract_strided_slice %10 {offsets = [0, 32], sizes = [2, 32], strides = [1, 1]} : vector<2x128xf32> to vector<2x32xf32>
    %28 = arith.negf %27 : vector<2x32xf32>
    %29 = math.exp %28 : vector<2x32xf32>
    %cst_22 = arith.constant 1.000000e+00 : f32
    %30 = vector.broadcast %cst_22 : f32 to vector<2x32xf32>
    %31 = arith.addf %30, %29 : vector<2x32xf32>
    %32 = arith.divf %30, %31 : vector<2x32xf32>
    %33 = vector.extract_strided_slice %10 {offsets = [0, 64], sizes = [2, 32], strides = [1, 1]} : vector<2x128xf32> to vector<2x32xf32>
    %34 = math.tanh %33 : vector<2x32xf32>
    %35 = vector.extract_strided_slice %10 {offsets = [0, 96], sizes = [2, 32], strides = [1, 1]} : vector<2x128xf32> to vector<2x32xf32>
    %36 = arith.negf %35 : vector<2x32xf32>
    %37 = math.exp %36 : vector<2x32xf32>
    %cst_23 = arith.constant 1.000000e+00 : f32
    %38 = vector.broadcast %cst_23 : f32 to vector<2x32xf32>
    %39 = arith.addf %38, %37 : vector<2x32xf32>
    %40 = arith.divf %38, %39 : vector<2x32xf32>
    %41 = arith.mulf %32, %20 : vector<2x32xf32>
    %42 = arith.mulf %26, %34 : vector<2x32xf32>
    %43 = arith.addf %41, %42 : vector<2x32xf32>
    %44 = math.tanh %43 : vector<2x32xf32>
    %45 = arith.mulf %40, %44 : vector<2x32xf32>
    %c1_24 = arith.constant 1 : index
    %c0_25 = arith.constant 0 : index
    %c0_26 = arith.constant 0 : index
    %46 = vector.load %arg7[%c1_24, %c0_25, %c0_26] : memref<2x2x32xf32, #tpu.memory_space<vmem>>, vector<1x2x32xf32>
    %47 = vector.shape_cast %46 : vector<1x2x32xf32> to vector<2x32xf32>
    %48 = vector.extract_strided_slice %18 {offsets = [0, 0], sizes = [2, 32], strides = [1, 1]} : vector<2x128xf32> to vector<2x32xf32>
    %49 = arith.negf %48 : vector<2x32xf32>
    %50 = math.exp %49 : vector<2x32xf32>
    %cst_27 = arith.constant 1.000000e+00 : f32
    %51 = vector.broadcast %cst_27 : f32 to vector<2x32xf32>
    %52 = arith.addf %51, %50 : vector<2x32xf32>
    %53 = arith.divf %51, %52 : vector<2x32xf32>
    %54 = vector.extract_strided_slice %18 {offsets = [0, 32], sizes = [2, 32], strides = [1, 1]} : vector<2x128xf32> to vector<2x32xf32>
    %55 = arith.negf %54 : vector<2x32xf32>
    %56 = math.exp %55 : vector<2x32xf32>
    %cst_28 = arith.constant 1.000000e+00 : f32
    %57 = vector.broadcast %cst_28 : f32 to vector<2x32xf32>
    %58 = arith.addf %57, %56 : vector<2x32xf32>
    %59 = arith.divf %57, %58 : vector<2x32xf32>
    %60 = vector.extract_strided_slice %18 {offsets = [0, 64], sizes = [2, 32], strides = [1, 1]} : vector<2x128xf32> to vector<2x32xf32>
    %61 = math.tanh %60 : vector<2x32xf32>
    %62 = vector.extract_strided_slice %18 {offsets = [0, 96], sizes = [2, 32], strides = [1, 1]} : vector<2x128xf32> to vector<2x32xf32>
    %63 = arith.negf %62 : vector<2x32xf32>
    %64 = math.exp %63 : vector<2x32xf32>
    %cst_29 = arith.constant 1.000000e+00 : f32
    %65 = vector.broadcast %cst_29 : f32 to vector<2x32xf32>
    %66 = arith.addf %65, %64 : vector<2x32xf32>
    %67 = arith.divf %65, %66 : vector<2x32xf32>
    %68 = arith.mulf %59, %47 : vector<2x32xf32>
    %69 = arith.mulf %53, %61 : vector<2x32xf32>
    %70 = arith.addf %68, %69 : vector<2x32xf32>
    %71 = math.tanh %70 : vector<2x32xf32>
    %72 = arith.mulf %67, %71 : vector<2x32xf32>
    %c0_30 = arith.constant 0 : index
    %c0_31 = arith.constant 0 : index
    %c0_32 = arith.constant 0 : index
    %73 = vector.load %arg6[%c0_30, %c0_31, %c0_32] : memref<2x2x32xf32, #tpu.memory_space<vmem>>, vector<1x2x32xf32>
    %74 = vector.shape_cast %73 : vector<1x2x32xf32> to vector<2x32xf32>
    %75 = vector.shape_cast %45 : vector<2x32xf32> to vector<1x2x32xf32>
    tpu.vector_store %arg6[%c0_30, %c0_31, %c0_32], %75 {strides = array<i32>} : memref<2x2x32xf32, #tpu.memory_space<vmem>>, vector<1x2x32xf32>,
    %c0_33 = arith.constant 0 : index
    %c0_34 = arith.constant 0 : index
    %c0_35 = arith.constant 0 : index
    %76 = vector.load %arg7[%c0_33, %c0_34, %c0_35] : memref<2x2x32xf32, #tpu.memory_space<vmem>>, vector<1x2x32xf32>
    %77 = vector.shape_cast %76 : vector<1x2x32xf32> to vector<2x32xf32>
    %78 = vector.shape_cast %43 : vector<2x32xf32> to vector<1x2x32xf32>
    tpu.vector_store %arg7[%c0_33, %c0_34, %c0_35], %78 {strides = array<i32>} : memref<2x2x32xf32, #tpu.memory_space<vmem>>, vector<1x2x32xf32>,
    %c1_36 = arith.constant 1 : index
    %c0_37 = arith.constant 0 : index
    %c0_38 = arith.constant 0 : index
    %79 = vector.load %arg6[%c1_36, %c0_37, %c0_38] : memref<2x2x32xf32, #tpu.memory_space<vmem>>, vector<1x2x32xf32>
    %80 = vector.shape_cast %79 : vector<1x2x32xf32> to vector<2x32xf32>
    %81 = vector.shape_cast %72 : vector<2x32xf32> to vector<1x2x32xf32>
    tpu.vector_store %arg6[%c1_36, %c0_37, %c0_38], %81 {strides = array<i32>} : memref<2x2x32xf32, #tpu.memory_space<vmem>>, vector<1x2x32xf32>,
    %c1_39 = arith.constant 1 : index
    %c0_40 = arith.constant 0 : index
    %c0_41 = arith.constant 0 : index
    %82 = vector.load %arg7[%c1_39, %c0_40, %c0_41] : memref<2x2x32xf32, #tpu.memory_space<vmem>>, vector<1x2x32xf32>
    %83 = vector.shape_cast %82 : vector<1x2x32xf32> to vector<2x32xf32>
    %84 = vector.shape_cast %70 : vector<2x32xf32> to vector<1x2x32xf32>
    tpu.vector_store %arg7[%c1_39, %c0_40, %c0_41], %84 {strides = array<i32>} : memref<2x2x32xf32, #tpu.memory_space<vmem>>, vector<1x2x32xf32>,
    %85 = vector.shape_cast %45 : vector<2x32xf32> to vector<1x2x32xf32>
    %86 = arith.index_cast %arg0 : i32 to index
    %c0_42 = arith.constant 0 : index
    %c0_43 = arith.constant 0 : index
    %87 = vector.load %arg4[%86, %c0_42, %c0_43] : memref<8x2x64xf32, #tpu.memory_space<vmem>>, vector<1x2x32xf32>
    tpu.vector_store %arg4[%86, %c0_42, %c0_43], %85 {strides = array<i32>} : memref<8x2x64xf32, #tpu.memory_space<vmem>>, vector<1x2x32xf32>,
    %88 = vector.shape_cast %72 : vector<2x32xf32> to vector<1x2x32xf32>
    %c7_i32 = arith.constant 7 : i32
    %89 = arith.subi %c7_i32, %arg0 : i32
    %90 = arith.index_cast %89 : i32 to index
    %c0_44 = arith.constant 0 : index
    %c32 = arith.constant 32 : index
    %91 = vector.load %arg4[%90, %c0_44, %c32] : memref<8x2x64xf32, #tpu.memory_space<vmem>>, vector<1x2x32xf32>
    tpu.vector_store %arg4[%90, %c0_44, %c32], %88 {strides = array<i32>} : memref<8x2x64xf32, #tpu.memory_space<vmem>>, vector<1x2x32xf32>,
    %c7_i32_45 = arith.constant 7 : i32
    %92 = arith.cmpi eq, %arg0, %c7_i32_45 : i32
    %93 = arith.extui %92 : i1 to i32
    %c0_i32_46 = arith.constant 0 : i32
    %94 = arith.cmpi ne, %93, %c0_i32_46 : i32
    scf.if %94 {
      %c0_47 = arith.constant 0 : index
      %c0_48 = arith.constant 0 : index
      %95 = vector.load %arg5[%c0_47, %c0_48] : memref<2x64xf32, #tpu.memory_space<vmem>>, vector<2x32xf32>
      tpu.vector_store %arg5[%c0_47, %c0_48], %45 {strides = array<i32>} : memref<2x64xf32, #tpu.memory_space<vmem>>, vector<2x32xf32>,
      %c0_49 = arith.constant 0 : index
      %c32_50 = arith.constant 32 : index
      %96 = vector.load %arg5[%c0_49, %c32_50] : memref<2x64xf32, #tpu.memory_space<vmem>>, vector<2x32xf32>
      tpu.vector_store %arg5[%c0_49, %c32_50], %72 {strides = array<i32>} : memref<2x64xf32, #tpu.memory_space<vmem>>, vector<2x32xf32>,
    } else {
    }
    return
  }
  func.func @transform_0(%arg0: i32) -> (i32, i32, i32) {
    %c0_i32 = arith.constant 0 : i32
    %c0_i32_0 = arith.constant 0 : i32
    %c0_i32_1 = arith.constant 0 : i32
    return %arg0, %c0_i32, %c0_i32_0 : i32, i32, i32
  }
  func.func @transform_1(%arg0: i32) -> (i32, i32, i32) {
    %c7_i32 = arith.constant 7 : i32
    %0 = arith.subi %c7_i32, %arg0 : i32
    %c0_i32 = arith.constant 0 : i32
    %c0_i32_0 = arith.constant 0 : i32
    %c0_i32_1 = arith.constant 0 : i32
    return %0, %c0_i32, %c0_i32_0 : i32, i32, i32
  }
  func.func @transform_2(%arg0: i32) -> (i32, i32, i32) {
    %c0_i32 = arith.constant 0 : i32
    %c0_i32_0 = arith.constant 0 : i32
    %c0_i32_1 = arith.constant 0 : i32
    %c0_i32_2 = arith.constant 0 : i32
    return %c0_i32, %c0_i32_0, %c0_i32_1 : i32, i32, i32
  }
  func.func @transform_3(%arg0: i32) -> (i32, i32, i32) {
    %c0_i32 = arith.constant 0 : i32
    %c0_i32_0 = arith.constant 0 : i32
    %c0_i32_1 = arith.constant 0 : i32
    %c0_i32_2 = arith.constant 0 : i32
    return %c0_i32, %c0_i32_0, %c0_i32_1 : i32, i32, i32
  }
  func.func @transform_4(%arg0: i32) -> (i32, i32) {
    %c0_i32 = arith.constant 0 : i32
    %c0_i32_0 = arith.constant 0 : i32
    %c0_i32_1 = arith.constant 0 : i32
    return %c0_i32, %c0_i32_0 : i32, i32
  }
}

module attributes {stable_mosaic.version = 11 : i64} {
  func.func @_bidir_lstm_kernel(%arg0: i32, %arg1: memref<1x2x128xf32, #tpu.memory_space<vmem>>, %arg2: memref<1x2x128xf32, #tpu.memory_space<vmem>>, %arg3: memref<2x32x128xf32, #tpu.memory_space<vmem>>, %arg4: memref<8x2x64xf32, #tpu.memory_space<vmem>>, %arg5: memref<2x64xf32, #tpu.memory_space<vmem>>, %arg6: memref<2x2x32xf32, #tpu.memory_space<vmem>>, %arg7: memref<2x2x32xf32, #tpu.memory_space<vmem>>) attributes {dimension_semantics = [#tpu.dimension_semantics<arbitrary>], iteration_bounds = array<i64: 8>, scalar_prefetch = 0 : i64, scratch_operands = 2 : i64, tpu.core_type = #tpu.core_type<tc>, window_params = [{transform_indices = @transform_0, window_bounds = array<i64: 1, 2, 128>}, {transform_indices = @transform_1, window_bounds = array<i64: 1, 2, 128>}, {pipeline_mode = #tpu.pipeline_mode<synchronous>, transform_indices = @transform_2, window_bounds = array<i64: 2, 32, 128>}, {pipeline_mode = #tpu.pipeline_mode<synchronous>, transform_indices = @transform_3, window_bounds = array<i64: 8, 2, 64>}, {pipeline_mode = #tpu.pipeline_mode<synchronous>, transform_indices = @transform_4, window_bounds = array<i64: 2, 64>}]} {
    %c0_i32 = arith.constant 0 : i32
    %0 = arith.cmpi eq, %arg0, %c0_i32 : i32
    %1 = arith.extui %0 : i1 to i32
    %c0_i32_0 = arith.constant 0 : i32
    %2 = arith.cmpi ne, %1, %c0_i32_0 : i32
    scf.if %2 {
      %cst_47 = arith.constant 0.000000e+00 : f32
      %95 = vector.broadcast %cst_47 : f32 to vector<2x2x32xf32>
      %c0_48 = arith.constant 0 : index
      %c0_49 = arith.constant 0 : index
      %c0_50 = arith.constant 0 : index
      %96 = vector.load %arg6[%c0_48, %c0_49, %c0_50] : memref<2x2x32xf32, #tpu.memory_space<vmem>>, vector<2x2x32xf32>
      tpu.vector_store %arg6[%c0_48, %c0_49, %c0_50], %95 {strides = array<i32>} : memref<2x2x32xf32, #tpu.memory_space<vmem>>, vector<2x2x32xf32>,
      %cst_51 = arith.constant 0.000000e+00 : f32
      %97 = vector.broadcast %cst_51 : f32 to vector<2x2x32xf32>
      %c0_52 = arith.constant 0 : index
      %c0_53 = arith.constant 0 : index
      %c0_54 = arith.constant 0 : index
      %98 = vector.load %arg7[%c0_52, %c0_53, %c0_54] : memref<2x2x32xf32, #tpu.memory_space<vmem>>, vector<2x2x32xf32>
      tpu.vector_store %arg7[%c0_52, %c0_53, %c0_54], %97 {strides = array<i32>} : memref<2x2x32xf32, #tpu.memory_space<vmem>>, vector<2x2x32xf32>,
    } else {
    }
    %c0 = arith.constant 0 : index
    %c0_1 = arith.constant 0 : index
    %c0_2 = arith.constant 0 : index
    %3 = vector.load %arg1[%c0, %c0_1, %c0_2] : memref<1x2x128xf32, #tpu.memory_space<vmem>>, vector<1x2x128xf32>
    %4 = vector.shape_cast %3 : vector<1x2x128xf32> to vector<2x128xf32>
    %c0_3 = arith.constant 0 : index
    %c0_4 = arith.constant 0 : index
    %c0_5 = arith.constant 0 : index
    %5 = vector.load %arg6[%c0_3, %c0_4, %c0_5] : memref<2x2x32xf32, #tpu.memory_space<vmem>>, vector<1x2x32xf32>
    %6 = vector.shape_cast %5 : vector<1x2x32xf32> to vector<2x32xf32>
    %c0_6 = arith.constant 0 : index
    %c0_7 = arith.constant 0 : index
    %c0_8 = arith.constant 0 : index
    %7 = vector.load %arg3[%c0_6, %c0_7, %c0_8] : memref<2x32x128xf32, #tpu.memory_space<vmem>>, vector<1x32x128xf32>
    %8 = vector.shape_cast %7 : vector<1x32x128xf32> to vector<32x128xf32>
    %cst = arith.constant dense<0.000000e+00> : vector<2x128xf32>
    %9 = tpu.matmul %6, %8, %cst {dimension_numbers = #tpu.dot_dimension_numbers<[1], [0], [0], [1], [0, 0, 1, 1], [], []>} : vector<2x32xf32>, vector<32x128xf32>, vector<2x128xf32> -> vector<2x128xf32>
    %10 = arith.addf %4, %9 : vector<2x128xf32>
    %c0_9 = arith.constant 0 : index
    %c0_10 = arith.constant 0 : index
    %c0_11 = arith.constant 0 : index
    %11 = vector.load %arg2[%c0_9, %c0_10, %c0_11] : memref<1x2x128xf32, #tpu.memory_space<vmem>>, vector<1x2x128xf32>
    %12 = vector.shape_cast %11 : vector<1x2x128xf32> to vector<2x128xf32>
    %c1 = arith.constant 1 : index
    %c0_12 = arith.constant 0 : index
    %c0_13 = arith.constant 0 : index
    %13 = vector.load %arg6[%c1, %c0_12, %c0_13] : memref<2x2x32xf32, #tpu.memory_space<vmem>>, vector<1x2x32xf32>
    %14 = vector.shape_cast %13 : vector<1x2x32xf32> to vector<2x32xf32>
    %c1_14 = arith.constant 1 : index
    %c0_15 = arith.constant 0 : index
    %c0_16 = arith.constant 0 : index
    %15 = vector.load %arg3[%c1_14, %c0_15, %c0_16] : memref<2x32x128xf32, #tpu.memory_space<vmem>>, vector<1x32x128xf32>
    %16 = vector.shape_cast %15 : vector<1x32x128xf32> to vector<32x128xf32>
    %cst_17 = arith.constant dense<0.000000e+00> : vector<2x128xf32>
    %17 = tpu.matmul %14, %16, %cst_17 {dimension_numbers = #tpu.dot_dimension_numbers<[1], [0], [0], [1], [0, 0, 1, 1], [], []>} : vector<2x32xf32>, vector<32x128xf32>, vector<2x128xf32> -> vector<2x128xf32>
    %18 = arith.addf %12, %17 : vector<2x128xf32>
    %c0_18 = arith.constant 0 : index
    %c0_19 = arith.constant 0 : index
    %c0_20 = arith.constant 0 : index
    %19 = vector.load %arg7[%c0_18, %c0_19, %c0_20] : memref<2x2x32xf32, #tpu.memory_space<vmem>>, vector<1x2x32xf32>
    %20 = vector.shape_cast %19 : vector<1x2x32xf32> to vector<2x32xf32>
    %21 = vector.extract_strided_slice %10 {offsets = [0, 0], sizes = [2, 32], strides = [1, 1]} : vector<2x128xf32> to vector<2x32xf32>
    %22 = arith.negf %21 : vector<2x32xf32>
    %23 = math.exp %22 : vector<2x32xf32>
    %cst_21 = arith.constant 1.000000e+00 : f32
    %24 = vector.broadcast %cst_21 : f32 to vector<2x32xf32>
    %25 = arith.addf %24, %23 : vector<2x32xf32>
    %26 = arith.divf %24, %25 : vector<2x32xf32>
    %27 = vector.extract_strided_slice %10 {offsets = [0, 32], sizes = [2, 32], strides = [1, 1]} : vector<2x128xf32> to vector<2x32xf32>
    %28 = arith.negf %27 : vector<2x32xf32>
    %29 = math.exp %28 : vector<2x32xf32>
    %cst_22 = arith.constant 1.000000e+00 : f32
    %30 = vector.broadcast %cst_22 : f32 to vector<2x32xf32>
    %31 = arith.addf %30, %29 : vector<2x32xf32>
    %32 = arith.divf %30, %31 : vector<2x32xf32>
    %33 = vector.extract_strided_slice %10 {offsets = [0, 64], sizes = [2, 32], strides = [1, 1]} : vector<2x128xf32> to vector<2x32xf32>
    %34 = math.tanh %33 : vector<2x32xf32>
    %35 = vector.extract_strided_slice %10 {offsets = [0, 96], sizes = [2, 32], strides = [1, 1]} : vector<2x128xf32> to vector<2x32xf32>
    %36 = arith.negf %35 : vector<2x32xf32>
    %37 = math.exp %36 : vector<2x32xf32>
    %cst_23 = arith.constant 1.000000e+00 : f32
    %38 = vector.broadcast %cst_23 : f32 to vector<2x32xf32>
    %39 = arith.addf %38, %37 : vector<2x32xf32>
    %40 = arith.divf %38, %39 : vector<2x32xf32>
    %41 = arith.mulf %32, %20 : vector<2x32xf32>
    %42 = arith.mulf %26, %34 : vector<2x32xf32>
    %43 = arith.addf %41, %42 : vector<2x32xf32>
    %44 = math.tanh %43 : vector<2x32xf32>
    %45 = arith.mulf %40, %44 : vector<2x32xf32>
    %c1_24 = arith.constant 1 : index
    %c0_25 = arith.constant 0 : index
    %c0_26 = arith.constant 0 : index
    %46 = vector.load %arg7[%c1_24, %c0_25, %c0_26] : memref<2x2x32xf32, #tpu.memory_space<vmem>>, vector<1x2x32xf32>
    %47 = vector.shape_cast %46 : vector<1x2x32xf32> to vector<2x32xf32>
    %48 = vector.extract_strided_slice %18 {offsets = [0, 0], sizes = [2, 32], strides = [1, 1]} : vector<2x128xf32> to vector<2x32xf32>
    %49 = arith.negf %48 : vector<2x32xf32>
    %50 = math.exp %49 : vector<2x32xf32>
    %cst_27 = arith.constant 1.000000e+00 : f32
    %51 = vector.broadcast %cst_27 : f32 to vector<2x32xf32>
    %52 = arith.addf %51, %50 : vector<2x32xf32>
    %53 = arith.divf %51, %52 : vector<2x32xf32>
    %54 = vector.extract_strided_slice %18 {offsets = [0, 32], sizes = [2, 32], strides = [1, 1]} : vector<2x128xf32> to vector<2x32xf32>
    %55 = arith.negf %54 : vector<2x32xf32>
    %56 = math.exp %55 : vector<2x32xf32>
    %cst_28 = arith.constant 1.000000e+00 : f32
    %57 = vector.broadcast %cst_28 : f32 to vector<2x32xf32>
    %58 = arith.addf %57, %56 : vector<2x32xf32>
    %59 = arith.divf %57, %58 : vector<2x32xf32>
    %60 = vector.extract_strided_slice %18 {offsets = [0, 64], sizes = [2, 32], strides = [1, 1]} : vector<2x128xf32> to vector<2x32xf32>
    %61 = math.tanh %60 : vector<2x32xf32>
    %62 = vector.extract_strided_slice %18 {offsets = [0, 96], sizes = [2, 32], strides = [1, 1]} : vector<2x128xf32> to vector<2x32xf32>
    %63 = arith.negf %62 : vector<2x32xf32>
    %64 = math.exp %63 : vector<2x32xf32>
    %cst_29 = arith.constant 1.000000e+00 : f32
    %65 = vector.broadcast %cst_29 : f32 to vector<2x32xf32>
    %66 = arith.addf %65, %64 : vector<2x32xf32>
    %67 = arith.divf %65, %66 : vector<2x32xf32>
    %68 = arith.mulf %59, %47 : vector<2x32xf32>
    %69 = arith.mulf %53, %61 : vector<2x32xf32>
    %70 = arith.addf %68, %69 : vector<2x32xf32>
    %71 = math.tanh %70 : vector<2x32xf32>
    %72 = arith.mulf %67, %71 : vector<2x32xf32>
    %c0_30 = arith.constant 0 : index
    %c0_31 = arith.constant 0 : index
    %c0_32 = arith.constant 0 : index
    %73 = vector.load %arg6[%c0_30, %c0_31, %c0_32] : memref<2x2x32xf32, #tpu.memory_space<vmem>>, vector<1x2x32xf32>
    %74 = vector.shape_cast %73 : vector<1x2x32xf32> to vector<2x32xf32>
    %75 = vector.shape_cast %45 : vector<2x32xf32> to vector<1x2x32xf32>
    tpu.vector_store %arg6[%c0_30, %c0_31, %c0_32], %75 {strides = array<i32>} : memref<2x2x32xf32, #tpu.memory_space<vmem>>, vector<1x2x32xf32>,
    %c0_33 = arith.constant 0 : index
    %c0_34 = arith.constant 0 : index
    %c0_35 = arith.constant 0 : index
    %76 = vector.load %arg7[%c0_33, %c0_34, %c0_35] : memref<2x2x32xf32, #tpu.memory_space<vmem>>, vector<1x2x32xf32>
    %77 = vector.shape_cast %76 : vector<1x2x32xf32> to vector<2x32xf32>
    %78 = vector.shape_cast %43 : vector<2x32xf32> to vector<1x2x32xf32>
    tpu.vector_store %arg7[%c0_33, %c0_34, %c0_35], %78 {strides = array<i32>} : memref<2x2x32xf32, #tpu.memory_space<vmem>>, vector<1x2x32xf32>,
    %c1_36 = arith.constant 1 : index
    %c0_37 = arith.constant 0 : index
    %c0_38 = arith.constant 0 : index
    %79 = vector.load %arg6[%c1_36, %c0_37, %c0_38] : memref<2x2x32xf32, #tpu.memory_space<vmem>>, vector<1x2x32xf32>
    %80 = vector.shape_cast %79 : vector<1x2x32xf32> to vector<2x32xf32>
    %81 = vector.shape_cast %72 : vector<2x32xf32> to vector<1x2x32xf32>
    tpu.vector_store %arg6[%c1_36, %c0_37, %c0_38], %81 {strides = array<i32>} : memref<2x2x32xf32, #tpu.memory_space<vmem>>, vector<1x2x32xf32>,
    %c1_39 = arith.constant 1 : index
    %c0_40 = arith.constant 0 : index
    %c0_41 = arith.constant 0 : index
    %82 = vector.load %arg7[%c1_39, %c0_40, %c0_41] : memref<2x2x32xf32, #tpu.memory_space<vmem>>, vector<1x2x32xf32>
    %83 = vector.shape_cast %82 : vector<1x2x32xf32> to vector<2x32xf32>
    %84 = vector.shape_cast %70 : vector<2x32xf32> to vector<1x2x32xf32>
    tpu.vector_store %arg7[%c1_39, %c0_40, %c0_41], %84 {strides = array<i32>} : memref<2x2x32xf32, #tpu.memory_space<vmem>>, vector<1x2x32xf32>,
    %85 = vector.shape_cast %45 : vector<2x32xf32> to vector<1x2x32xf32>
    %86 = arith.index_cast %arg0 : i32 to index
    %c0_42 = arith.constant 0 : index
    %c0_43 = arith.constant 0 : index
    %87 = vector.load %arg4[%86, %c0_42, %c0_43] : memref<8x2x64xf32, #tpu.memory_space<vmem>>, vector<1x2x32xf32>
    tpu.vector_store %arg4[%86, %c0_42, %c0_43], %85 {strides = array<i32>} : memref<8x2x64xf32, #tpu.memory_space<vmem>>, vector<1x2x32xf32>,
    %88 = vector.shape_cast %72 : vector<2x32xf32> to vector<1x2x32xf32>
    %c7_i32 = arith.constant 7 : i32
    %89 = arith.subi %c7_i32, %arg0 : i32
    %90 = arith.index_cast %89 : i32 to index
    %c0_44 = arith.constant 0 : index
    %c32 = arith.constant 32 : index
    %91 = vector.load %arg4[%90, %c0_44, %c32] : memref<8x2x64xf32, #tpu.memory_space<vmem>>, vector<1x2x32xf32>
    tpu.vector_store %arg4[%90, %c0_44, %c32], %88 {strides = array<i32>} : memref<8x2x64xf32, #tpu.memory_space<vmem>>, vector<1x2x32xf32>,
    %c7_i32_45 = arith.constant 7 : i32
    %92 = arith.cmpi eq, %arg0, %c7_i32_45 : i32
    %93 = arith.extui %92 : i1 to i32
    %c0_i32_46 = arith.constant 0 : i32
    %94 = arith.cmpi ne, %93, %c0_i32_46 : i32
    scf.if %94 {
      %c0_47 = arith.constant 0 : index
      %c0_48 = arith.constant 0 : index
      %95 = vector.load %arg5[%c0_47, %c0_48] : memref<2x64xf32, #tpu.memory_space<vmem>>, vector<2x32xf32>
      tpu.vector_store %arg5[%c0_47, %c0_48], %45 {strides = array<i32>} : memref<2x64xf32, #tpu.memory_space<vmem>>, vector<2x32xf32>,
      %c0_49 = arith.constant 0 : index
      %c32_50 = arith.constant 32 : index
      %96 = vector.load %arg5[%c0_49, %c32_50] : memref<2x64xf32, #tpu.memory_space<vmem>>, vector<2x32xf32>
      tpu.vector_store %arg5[%c0_49, %c32_50], %72 {strides = array<i32>} : memref<2x64xf32, #tpu.memory_space<vmem>>, vector<2x32xf32>,
    } else {
    }
    return
  }
  func.func @transform_0(%arg0: i32) -> (i32, i32, i32) {
    %c0_i32 = arith.constant 0 : i32
    %c0_i32_0 = arith.constant 0 : i32
    %c0_i32_1 = arith.constant 0 : i32
    return %arg0, %c0_i32, %c0_i32_0 : i32, i32, i32
  }
  func.func @transform_1(%arg0: i32) -> (i32, i32, i32) {
    %c7_i32 = arith.constant 7 : i32
    %0 = arith.subi %c7_i32, %arg0 : i32
    %c0_i32 = arith.constant 0 : i32
    %c0_i32_0 = arith.constant 0 : i32
    %c0_i32_1 = arith.constant 0 : i32
    return %0, %c0_i32, %c0_i32_0 : i32, i32, i32
  }
  func.func @transform_2(%arg0: i32) -> (i32, i32, i32) {
    %c0_i32 = arith.constant 0 : i32
    %c0_i32_0 = arith.constant 0 : i32
    %c0_i32_1 = arith.constant 0 : i32
    %c0_i32_2 = arith.constant 0 : i32
    return %c0_i32, %c0_i32_0, %c0_i32_1 : i32, i32, i32
  }
  func.func @transform_3(%arg0: i32) -> (i32, i32, i32) {
    %c0_i32 = arith.constant 0 : i32
    %c0_i32_0 = arith.constant 0 : i32
    %c0_i32_1 = arith.constant 0 : i32
    %c0_i32_2 = arith.constant 0 : i32
    return %c0_i32, %c0_i32_0, %c0_i32_1 : i32, i32, i32
  }
  func.func @transform_4(%arg0: i32) -> (i32, i32) {
    %c0_i32 = arith.constant 0 : i32
    %c0_i32_0 = arith.constant 0 : i32
    %c0_i32_1 = arith.constant 0 : i32
    return %c0_i32, %c0_i32_0 : i32, i32
  }
}

</mosaic_0001>

<bundles_post_ra>
// kernel: rnn_forward.7
= control target key start
LH: loop header
LB: loop body
LE: loop exit
PB: predicated region body
PF: predicated region fallthrough
CT: control target
= control target key end

     0   :  { %10 = vsyncpa [#allocation5], 0  ;;  %s719_s15 = smov 0   ;;  %s827_s0 = inlined_call_operand.vmem [shape: f32[8,2,128], index: 0, kind: input, shape index: {}]   ;;  %s828_s1 = inlined_call_operand.vmem [shape: f32[8,2,128], index: 1, kind: input, shape index: {}]   ;;  %s829_s2 = inlined_call_operand.vmem [shape: f32[2,32,128], index: 2, kind: input, shape index: {}]   ;;  %s830_s3 = inlined_call_operand.hbm [shape: f32[8,2,64], index: 3, kind: output, shape index: {0}]   ;;  %s831_s4 = inlined_call_operand.vmem [shape: f32[2,64], index: 4, kind: output, shape index: {1}]  }
   0x1 LB: > { %s725_s16 = sadd.s32 4294967295, %s683_s15   ;;  %p545_p0 = scmp.ge.s32.totalorder %s683_s15, 1  ;;  %s683_s15 = sphi %s719_s15, %s16_s15  }
   0x2   : > { %p168_p1 = scmp.lt.s32.totalorder %s683_s15, 9 }
   0x4   : > { %p169_p2 = pnand %p545_p0, %p168_p1 }
   0x5   : > { %p193_p3 = scmp.lt.s32.totalorder (!%p169_p2), %s725_s16, 7  ;;  %s731_s17 = ssub.s32 (!%p169_p2), 7, %s725_s16 }
   0x6   : > { %172 = sbr.rel (%p169_p2) target bundleno = 769 (0x301), region = 32  ;;  %p198_p4 = scmp.lt.s32.totalorder (!%p169_p2), %s731_s17, 7 }
   0x7   : > { %p548_p5 = scmp.ne.s32.totalorder (!%p169_p2), %s725_s16, 0 }
   0xd   : > { %s194_s18 = scalar_select %p193_p3, %s725_s16, 7 }
   0xe   : > { %s199_s19 = scalar_select %p198_p4, %s731_s17, 7 }
   0xf   : > { %s546_s20 = sshll.u32 %s194_s18, 1  ;;  %206 = sbr.rel (%p548_p5) target bundleno = 22 (0x16), region = 36  ;;  %vm207_vm0 = vcmask (!%p548_p5), 254976   ;;  %v685_v0 = vmov (!%p548_p5), 0.0  }
  0x10   : > { %s739_s23 = scalar_lea.vmem %s827_s0, %s546_s20  ;;  %s547_s24 = sshll.u32 %s199_s19, 1  ;;  %208 = vst.msk [vmem:[#allocation2] sm:$0x3] (!%p548_p5), %vm207_vm0, %v685_v0  ;;  %209 = vst.msk [vmem:[#allocation2 + $0x2] sm:$0x3] (!%p548_p5), %vm207_vm0, %v685_v0 }
  0x11   : > { %s744_s27 = scalar_lea.vmem %s828_s1, %s547_s24  ;;  %210 = vst.msk [vmem:[#allocation3] sm:$0x3] (!%p548_p5), %vm207_vm0, %v685_v0  ;;  %211 = vst.msk [vmem:[#allocation3 + $0x2] sm:$0x3] (!%p548_p5), %vm207_vm0, %v685_v0 }
  0x16 PF: > { %v214_v1 = vld [vmem:[%s829_s2] sm:$0xff]  ;;  %v215_v2 = vld [vmem:[%s829_s2 + $0x8] sm:$0xff]  ;;  %v686_v4 = vmov 0.0|0.0   ;;  %v216_v7 = vld [vmem:[%s829_s2 + $0x10] sm:$0xff]  ;;  %vm687_vm1 = vmmov 0   ;;  %v688_v10 = vmov 0.0  }
  0x17   : > { %v550_v3 = vld [vmem:[%s829_s2 + $0x20] sm:$0xff]  ;;  %596 = vmatprep.subr.bf16.mxu0 %v686_v4  ;;  %v597_v5 = vpack.c.bf16 %v215_v2, %v214_v1  ;;  %602 = vmatprep.subr.bf16.mxu1 %v686_v4  ;;  %v551_v6 = vld [vmem:[%s829_s2 + $0x28] sm:$0xff]  ;;  %v217_v8 = vld [vmem:[%s829_s2 + $0x18] sm:$0xff]  ;;  %s689_s21 = smov 32   ;;  %vm218_vm2 = vcmask 261120   ;;  %s690_s22 = smov 64  }
  0x18   : > { %v603_v9 = vpack.c.bf16 %v551_v6, %v550_v3  ;;  %582 = vmatprep.mubr.msk.f32.mxu0 %vm687_vm1, %v688_v10  ;;  %v552_v11 = vld [vmem:[%s829_s2 + $0x30] sm:$0xff]  ;;  %v553_v12 = vld [vmem:[%s829_s2 + $0x38] sm:$0xff]  ;;  %593 = vmatprep.mubr.msk.f32.mxu1 %vm687_vm1, %v688_v10  ;;  %v600_v13 = vpack.c.bf16 %v217_v8, %v216_v7  ;;  %v375_v14 = vld [vmem:[#allocation3] sm:$0x3]  ;;  %vm438_vm3 = vcmask 254976   ;;  %s557_s24 = sshll.u32 %s725_s16, 1 }
  0x19   : > { %598 = vmatpush3.bf16.msra.mxu0 %v597_v5  ;;  %v606_v15 = vpack.c.bf16 %v553_v12, %v552_v11  ;;  %384 = vrot.lane.b32.xlu1 %v375_v14, %s689_s21  ;;  %v405_v16 = vld [vmem:[#allocation3 + $0x2] sm:$0x3]  ;;  %v213_v17 = vld [vmem:[#allocation2] sm:$0x3]  ;;  %v295_v18 = vld [vmem:[#allocation2 + $0x2] sm:$0x3] }
  0x1a   : > { %599 = vmatprep.subr.bf16.mxu0 %v686_v4  ;;  %604 = vmatpush3.bf16.msra.mxu1 %v603_v9  ;;  %v212_v19 = vld [vmem:[%s739_s23] sm:$0x3]  ;;  %s691_s23 = smov 96   ;;  %s456_s25 = scalar_lea.vmem [#allocation4], %s557_s24  ;;  %vm464_vm4 = vcmask 517376  }
  0x1b   : > { %605 = vmatprep.subr.bf16.mxu1 %v686_v4  ;;  %v293_v20 = vld [vmem:[%s744_s27] sm:$0x3]  ;;  %s558_s26 = sshll.u32 %s731_s17, 1  ;;  %p559_p6 = scmp.ne.s32.totalorder %s725_s16, 7 }
  0x1c   : > { %s463_s27 = scalar_lea.vmem [#allocation4], %s558_s26 }
  0x1d   : > { %601 = vmatpush3.bf16.msra.mxu0 %v600_v13  ;;  %414 = vrot.lane.b32.xlu1 %v405_v16, %s689_s21 }
  0x1e   : > { %607 = vmatpush3.bf16.msra.mxu1 %v606_v15 }
  0x20   : > { %583 = vmatmul.mubr.msk.f32.vlgmr.msra.gmra.mrb[0].mxu0 %vm218_vm2, %v213_v17 }
  0x21   : > { %594 = vmatmul.mubr.msk.f32.vlgmr.msra.gmra.mrb[0].mxu1 %vm218_vm2, %v295_v18 }
  0x8b   : > { %v385_v41 = vpop.permute.xlu1 %384 }
  0x8f   : > { %v415_v43 = vpop.permute.xlu1 %414 }
  0xf3   : > { %v288_v21 = vpop.f32.mrb[0].mxu0 }
  0xf4   : > { %v292_v22 = vadd.f32 %v288_v21, %v212_v19  ;;  %v584_v23 = vpop.f32.mrb[1].mxu0  ;;  %v370_v24 = vpop.f32.mrb[0].mxu1 }
  0xf5   : > { %v374_v25 = vadd.f32 %v370_v24, %v293_v20  ;;  %v595_v26 = vpop.f32.mrb[1].mxu1 }
  0xf6   : > { %631 = vtanh.f32 %v292_v22  ;;  %v555_v29 = vmul.f32 -1.442695, %v292_v22 }
  0xf7   : > { %633 = vtanh.f32 %v374_v25  ;;  %v556_v30 = vmul.f32 -1.442695, %v374_v25 }
  0xf8   : > { %635 = vpow2.f32 %v555_v29 }
  0xf9   : > { %637 = vpow2.f32 %v556_v30 }
 0x100   : > { %v632_v27 = vpop.eup %631 }
 0x101   : > { %389 = vrot.lane.b32.xlu0 %v632_v27, %s690_s22  ;;  %v634_v28 = vpop.eup %633 }
 0x102   : > { %v636_v31 = vpop.eup %635 }
 0x103   : > { %v379_v32 = vadd.f32 1.0, %v636_v31  ;;  %v638_v33 = vpop.eup %637 }
 0x104   : > { %v409_v34 = vadd.f32 1.0, %v638_v33 }
 0x105   : > { %419 = vrot.lane.b32.xlu0 %v634_v28, %s690_s22  ;;  %639 = vrcp.f32 %v379_v32 }
 0x106   : > { %641 = vrcp.f32 %v409_v34 }
 0x10f   : > { %v640_v35 = vpop.eup %639 }
 0x110   : > { %v642_v38 = vpop.eup %641  ;;  %v387_v42 = vmul.f32 %v640_v35, %v385_v41 }
 0x111   : > { %v417_v46 = vmul.f32 %v642_v38, %v415_v43 }
 0x173   : > { %v390_v36 = vpop.permute.xlu0 %389 }
 0x174   : > { %v392_v37 = vmul.f32 %v640_v35, %v390_v36 }
 0x176   : > { %394 = vrot.lane.b32.xlu0 %v392_v37, %s689_s21 }
 0x177   : > { %v420_v39 = vpop.permute.xlu0 %419 }
 0x178   : > { %v422_v40 = vmul.f32 %v642_v38, %v420_v39 }
 0x17a   : > { %424 = vrot.lane.b32.xlu1 %v422_v40, %s689_s21 }
 0x1e8   : > { %v395_v44 = vpop.permute.xlu0 %394 }
 0x1e9   : > { %v397_v45 = vadd.f32 %v395_v44, %v387_v42 }
 0x1eb   : > { %643 = vtanh.f32 %v397_v45 }
 0x1ec   : > { %v425_v47 = vpop.permute.xlu1 %424 }
 0x1ed   : > { %v427_v48 = vadd.f32 %v425_v47, %v417_v46 }
 0x1ef   : > { %645 = vtanh.f32 %v427_v48 }
 0x1f5   : > { %v644_v49 = vpop.eup %643 }
 0x1f6   : > { %400 = vrot.lane.b32.xlu0 %v644_v49, %s690_s22 }
 0x1f9   : > { %v646_v50 = vpop.eup %645 }
 0x1fa   : > { %430 = vrot.lane.b32.xlu1 %v646_v50, %s690_s22 }
 0x1fe   : > { %441 = vrot.lane.b32.xlu1 %v397_v45, %s691_s23 }
 0x202   : > { %451 = vrot.lane.b32.xlu1 %v427_v48, %s691_s23 }
 0x268   : > { %v401_v51 = vpop.permute.xlu0 %400 }
 0x269   : > { %v403_v52 = vmul.f32 %v640_v35, %v401_v51 }
 0x26b   : > { %435 = vrot.lane.b32.xlu0 %v403_v52, %s689_s21 }
 0x26c   : > { %v431_v53 = vpop.permute.xlu1 %430 }
 0x26d   : > { %v433_v54 = vmul.f32 %v642_v38, %v431_v53 }
 0x26f   : > { %446 = vrot.lane.b32.xlu0 %v433_v54, %s689_s21 }
 0x270   : > { %v442_v55 = vpop.permute.xlu1 %441 }
 0x271   : > { %444 = vst.msk [vmem:[#allocation3] sm:$0x3] %vm438_vm3, %v442_v55 }
 0x273   : > { %459 = vrot.lane.b32.xlu0 %v433_v54, %s690_s22 }
 0x274   : > { %v452_v56 = vpop.permute.xlu1 %451 }
 0x275   : > { %454 = vst.msk [vmem:[#allocation3 + $0x2] sm:$0x3] %vm438_vm3, %v452_v56 }
 0x2dd   : > { %v436_v57 = vpop.permute.xlu0 %435 }
 0x2de   : > { %439 = vst.msk [vmem:[#allocation2] sm:$0x3] %vm438_vm3, %v436_v57  ;;  %457 = vst.msk [vmem:[%s456_s25] sm:$0x3] %vm438_vm3, %v436_v57 }
 0x2df   : > { %470 = vst.msk [vmem:[%s831_s4] sm:$0x3] (!%p559_p6), %vm438_vm3, %v436_v57 }
 0x2e0   : > { %469 = sbr.rel (%p559_p6) target bundleno = 743 (0x2e7), region = 40 }
 0x2e1   : > { %v447_v58 = vpop.permute.xlu0 %446 }
 0x2e2   : > { %449 = vst.msk [vmem:[#allocation2 + $0x2] sm:$0x3] %vm438_vm3, %v447_v58 }
 0x2e5   : > { %v460_v59 = vpop.permute.xlu0 %459 }
 0x2e6   : > { %465 = vst.msk [vmem:[%s463_s27] sm:$0x3] %vm464_vm4, %v460_v59  ;;  %471 = vst.msk [vmem:[%s831_s4] sm:$0x3] (!%p559_p6), %vm464_vm4, %v460_v59 }
 0x2e7 PF: > { %p612_p7 = scmp.eq.s32.totalorder %s725_s16, 7  ;;  %s692_s17 = smov [#allocation4]  }
 0x2e8   : > { %s478_s6 = sshll.u32 %s692_s17, 4  ;;  %s479_s6 = int_to_ptr.vmem [resolvable:$true] %s478_s6 }
 0x2e9   : > { %s647_s7 = scalar_lea.vmem %s479_s6, 256  ;;  %p654_p11 = scmp.lt.s32.totalorder %s479_s6, %s479_s6 }
 0x2ea   : > { %p648_p8 = scmp.ne.s32.totalorder %s479_s6, %s647_s7  ;;  %p655_p12 = scmp.lt.s32.totalorder %s647_s7, %s647_s7 }
 0x2ec   : > { %p649_p9 = pnand %p648_p8, %p612_p7  ;;  %p656_p13 = por %p655_p12, %p654_p11 }
 0x2ee   : > { %p650_p10 = pneg %p649_p9 }
 0x2f0   : > { %p657_p0 = pnand %p656_p13, %p650_p10 }
 0x2f2   : > { %660 = shalt.err (!%p657_p0)
}
 0x2f3   : > { %s661_s10 = scalar_lea.hbm %s830_s3, 256 }
 0x2f4   : > { %p662_p1 = scmp.ne.s32.totalorder %s830_s3, %s661_s10  ;;  %p667_p4 = scmp.lt.u32.totalorder %s661_s10, %s830_s3 }
 0x2f6   : > { %p663_p2 = pnand %p662_p1, %p612_p7 }
 0x2f8   : > { %p664_p3 = pneg %p663_p2 }
 0x2fa   : > { %p669_p5 = pnand %p667_p4, %p664_p3 }
 0x2fc   : > { %672 = shalt.err (!%p669_p5)
}
 0x2fd   : > { %s693_s18 = smov 2  }
 0x2fe   : > { %609 = dma.vmem_to_hbm [thread:$0]  (%p612_p7), %s479_s6, 256, %s830_s3, [#allocation5], %s689_s21, %s689_s21, %s693_s18  }
 0x2ff   : > { %678 = dma.done.wait (%p612_p7), [#allocation5], 256  }
 0x300   : > { %680 = vsyncadd (%p612_p7), [#allocation5], 4294967040 }
 0x301 PF: > { %s16_s15 = sadd.s32 1, %s683_s15  }
 0x302   : > { %p13_p6 = scmp.ge.s32.totalorder %s16_s15, 10  }
 0x304   :  { %15 = sbr.rel (!%p13_p6) target bundleno = 1 (0x1), region = 83 }
 0x30b   :  { %500 = vsyncpa [#allocation5], 1 }
 0x30c   :  { %502 = vsyncpa [#allocation5 + $0x1], 1 }

// kernel: rnn_forward.4
= control target key start
LH: loop header
LB: loop body
LE: loop exit
PB: predicated region body
PF: predicated region fallthrough
CT: control target
= control target key end

     0   :  { %v149_v3 = vmov 0.0   ;;  %vm38_vm0 = vcmask 261120   ;;  %v28_v15 = vlaneseq  ;;  %s220_s1 = inlined_call_operand.vmem [shape: f32[32,256], index: 1, kind: input, shape index: {}]   ;;  %s221_s0 = inlined_call_operand.vmem [shape: f32[16,32], index: 0, kind: input, shape index: {}]   ;;  %s222_s2 = inlined_call_operand.vmem [shape: f32[1,256], index: 2, kind: input, shape index: {}]   ;;  %s223_s3 = inlined_call_operand.vmem [shape: f32[16,128], index: 3, kind: output, shape index: {0}]   ;;  %s224_s4 = inlined_call_operand.vmem [shape: f32[16,128], index: 4, kind: output, shape index: {1}]  }
   0x1   :  { %v19_v0 = vld [vmem:[%s220_s1 + $0x8] sm:$0xff]  ;;  %v21_v1 = vld [vmem:[%s220_s1 + $0x18] sm:$0xff]  ;;  %v18_v2 = vld [vmem:[%s220_s1] sm:$0xff]  ;;  %109 = vmatprep.mubr.f32.mxu0 %v149_v3  ;;  %115 = vmatprep.mubr.f32.mxu1 %v149_v3 }
   0x2   :  { %v136_v4 = vpack.c.bf16 %v21_v1, %v19_v0  ;;  %v20_v5 = vld [vmem:[%s220_s1 + $0x10] sm:$0xff]  ;;  %v23_v6 = vld [vmem:[%s220_s1 + $0x28] sm:$0xff]  ;;  %v25_v7 = vld [vmem:[%s220_s1 + $0x38] sm:$0xff]  ;;  %v29_v16 = vshrl.u32 %v28_v15, 7 }
   0x3   :  { %v138_v8 = vpack.c.bf16 %v20_v5, %v18_v2  ;;  %v140_v9 = vpack.c.bf16 %v25_v7, %v23_v6  ;;  %v22_v10 = vld [vmem:[%s220_s1 + $0x20] sm:$0xff]  ;;  %v24_v11 = vld [vmem:[%s220_s1 + $0x30] sm:$0xff]  ;;  %v17_v14 = vld [vmem:[%s221_s0 + $0x8] sm:$0xff] }
   0x4   :  { %137 = vmatprep.subr.bf16.mxu0 %v136_v4  ;;  %144 = vmatprep.subr.bf16.mxu1 %v136_v4  ;;  %v142_v12 = vpack.c.bf16 %v24_v11, %v22_v10  ;;  %v16_v13 = vld [vmem:[%s221_s0] sm:$0xff]  ;;  %v30_v17 = vsub.s32 0, %v29_v16  ;;  %v34_v19 = vsub.s32 1, %v29_v16 }
   0x5   :  { %139 = vmatpush1.bf16.msra.mxu0 %v138_v8  ;;  %146 = vmatpush1.bf16.msra.mxu1 %v138_v8  ;;  %v26_v18 = vld [vmem:[%s222_s2] sm:$0x3] }
   0x6   :  { %141 = vmatprep.subr.bf16.mxu0 %v140_v9  ;;  %145 = vmatprep.subr.bf16.mxu1 %v140_v9  ;;  %v31_v20 = vrot.slane %v26_v18, %v30_v17  ;;  %v35_v21 = vrot.slane %v26_v18, %v34_v19 }
   0x9   :  { %143 = vmatpush1.bf16.msra.mxu0 %v142_v12  ;;  %147 = vmatpush1.bf16.msra.mxu1 %v142_v12 }
   0xc   :  { %134 = vmatmul.mubr.msk.f32.vlgmr.msra.gmra.mrb[0].mxu0 %vm38_vm0, %v16_v13  ;;  %135 = vmatmul.mubr.msk.f32.vlgmr.msra.gmra.mrb[0].mxu1 %vm38_vm0, %v17_v14 }
  0xdf   :  { %v111_v22 = vpop.f32.mrb[0].mxu0  ;;  %v117_v23 = vpop.f32.mrb[0].mxu1 }
  0xe0   :  { %v112_v24 = vadd.f32 %v111_v22, %v31_v20  ;;  %v118_v25 = vadd.f32 %v117_v23, %v31_v20  ;;  %v113_v26 = vpop.f32.mrb[1].mxu0  ;;  %v119_v27 = vpop.f32.mrb[1].mxu1 }
  0xe1   :  { %v114_v28 = vadd.f32 %v113_v26, %v35_v21  ;;  %v120_v29 = vadd.f32 %v119_v27, %v35_v21 }
  0xe2   :  { %122 = vst [vmem:[%s223_s3] sm:$0xff] %v112_v24  ;;  %123 = vst [vmem:[%s223_s3 + $0x8] sm:$0xff] %v118_v25 }
  0xe3   :  { %124 = vst [vmem:[%s224_s4] sm:$0xff] %v114_v28  ;;  %125 = vst [vmem:[%s224_s4 + $0x8] sm:$0xff] %v120_v29 }

// kernel: rnn_forward.5
= control target key start
LH: loop header
LB: loop body
LE: loop exit
PB: predicated region body
PF: predicated region fallthrough
CT: control target
= control target key end

     0   :  { %10 = vsyncpa [#allocation5], 0  ;;  %s715_s15 = smov 0   ;;  %s821_s0 = inlined_call_operand.vmem [shape: f32[8,2,128], index: 0, kind: input, shape index: {}]   ;;  %s822_s1 = inlined_call_operand.vmem [shape: f32[8,2,128], index: 1, kind: input, shape index: {}]   ;;  %s823_s2 = inlined_call_operand.vmem [shape: f32[2,32,128], index: 2, kind: input, shape index: {}]   ;;  %s824_s3 = inlined_call_operand.vmem [shape: f32[8,2,64], index: 3, kind: output, shape index: {0}]   ;;  %s825_s4 = inlined_call_operand.hbm [shape: f32[2,64], index: 4, kind: output, shape index: {1}]  }
   0x1 LB: > { %s721_s16 = sadd.s32 4294967295, %s680_s15   ;;  %p543_p0 = scmp.ge.s32.totalorder %s680_s15, 1  ;;  %s680_s15 = sphi %s715_s15, %s16_s15  }
   0x2   : > { %p168_p1 = scmp.lt.s32.totalorder %s680_s15, 9 }
   0x4   : > { %p169_p2 = pnand %p543_p0, %p168_p1 }
   0x5   : > { %p193_p3 = scmp.lt.s32.totalorder (!%p169_p2), %s721_s16, 7  ;;  %s727_s17 = ssub.s32 (!%p169_p2), 7, %s721_s16 }
   0x6   : > { %172 = sbr.rel (%p169_p2) target bundleno = 768 (0x300), region = 32  ;;  %p198_p4 = scmp.lt.s32.totalorder (!%p169_p2), %s727_s17, 7 }
   0x7   : > { %p546_p5 = scmp.ne.s32.totalorder (!%p169_p2), %s721_s16, 0 }
   0xd   : > { %s194_s18 = scalar_select %p193_p3, %s721_s16, 7 }
   0xe   : > { %s199_s19 = scalar_select %p198_p4, %s727_s17, 7 }
   0xf   : > { %s544_s20 = sshll.u32 %s194_s18, 1  ;;  %206 = sbr.rel (%p546_p5) target bundleno = 22 (0x16), region = 36  ;;  %vm207_vm0 = vcmask (!%p546_p5), 254976   ;;  %v682_v0 = vmov (!%p546_p5), 0.0  }
  0x10   : > { %s735_s23 = scalar_lea.vmem %s821_s0, %s544_s20  ;;  %s545_s24 = sshll.u32 %s199_s19, 1  ;;  %208 = vst.msk [vmem:[#allocation2] sm:$0x3] (!%p546_p5), %vm207_vm0, %v682_v0  ;;  %209 = vst.msk [vmem:[#allocation2 + $0x2] sm:$0x3] (!%p546_p5), %vm207_vm0, %v682_v0 }
  0x11   : > { %s740_s27 = scalar_lea.vmem %s822_s1, %s545_s24  ;;  %210 = vst.msk [vmem:[#allocation3] sm:$0x3] (!%p546_p5), %vm207_vm0, %v682_v0  ;;  %211 = vst.msk [vmem:[#allocation3 + $0x2] sm:$0x3] (!%p546_p5), %vm207_vm0, %v682_v0 }
  0x16 PF: > { %v214_v1 = vld [vmem:[%s823_s2] sm:$0xff]  ;;  %v215_v2 = vld [vmem:[%s823_s2 + $0x8] sm:$0xff]  ;;  %v683_v4 = vmov 0.0|0.0   ;;  %v216_v7 = vld [vmem:[%s823_s2 + $0x10] sm:$0xff]  ;;  %vm684_vm1 = vmmov 0   ;;  %v685_v10 = vmov 0.0  }
  0x17   : > { %v548_v3 = vld [vmem:[%s823_s2 + $0x20] sm:$0xff]  ;;  %594 = vmatprep.subr.bf16.mxu0 %v683_v4  ;;  %v595_v5 = vpack.c.bf16 %v215_v2, %v214_v1  ;;  %600 = vmatprep.subr.bf16.mxu1 %v683_v4  ;;  %v549_v6 = vld [vmem:[%s823_s2 + $0x28] sm:$0xff]  ;;  %v217_v8 = vld [vmem:[%s823_s2 + $0x18] sm:$0xff]  ;;  %s686_s21 = smov 32   ;;  %vm218_vm2 = vcmask 261120   ;;  %s687_s22 = smov 64  }
  0x18   : > { %v601_v9 = vpack.c.bf16 %v549_v6, %v548_v3  ;;  %580 = vmatprep.mubr.msk.f32.mxu0 %vm684_vm1, %v685_v10  ;;  %v550_v11 = vld [vmem:[%s823_s2 + $0x30] sm:$0xff]  ;;  %v551_v12 = vld [vmem:[%s823_s2 + $0x38] sm:$0xff]  ;;  %591 = vmatprep.mubr.msk.f32.mxu1 %vm684_vm1, %v685_v10  ;;  %v598_v13 = vpack.c.bf16 %v217_v8, %v216_v7  ;;  %v375_v14 = vld [vmem:[#allocation3] sm:$0x3]  ;;  %vm438_vm3 = vcmask 254976   ;;  %s555_s24 = sshll.u32 %s721_s16, 1 }
  0x19   : > { %596 = vmatpush3.bf16.msra.mxu0 %v595_v5  ;;  %v604_v15 = vpack.c.bf16 %v551_v12, %v550_v11  ;;  %384 = vrot.lane.b32.xlu1 %v375_v14, %s686_s21  ;;  %v405_v16 = vld [vmem:[#allocation3 + $0x2] sm:$0x3]  ;;  %v213_v17 = vld [vmem:[#allocation2] sm:$0x3]  ;;  %v295_v18 = vld [vmem:[#allocation2 + $0x2] sm:$0x3] }
  0x1a   : > { %597 = vmatprep.subr.bf16.mxu0 %v683_v4  ;;  %602 = vmatpush3.bf16.msra.mxu1 %v601_v9  ;;  %v212_v19 = vld [vmem:[%s735_s23] sm:$0x3]  ;;  %s688_s23 = smov 96   ;;  %s556_s28 = sshll.u32 %s727_s17, 1  ;;  %vm464_vm4 = vcmask 517376  }
  0x1b   : > { %603 = vmatprep.subr.bf16.mxu1 %v683_v4  ;;  %v293_v20 = vld [vmem:[%s740_s27] sm:$0x3]  ;;  %s456_s27 = scalar_lea.vmem %s824_s3, %s555_s24  ;;  %s463_s5 = scalar_lea.vmem %s824_s3, %s556_s28 }
  0x1c   : > { %p557_p6 = scmp.ne.s32.totalorder %s721_s16, 7 }
  0x1d   : > { %599 = vmatpush3.bf16.msra.mxu0 %v598_v13  ;;  %414 = vrot.lane.b32.xlu1 %v405_v16, %s686_s21 }
  0x1e   : > { %605 = vmatpush3.bf16.msra.mxu1 %v604_v15 }
  0x20   : > { %581 = vmatmul.mubr.msk.f32.vlgmr.msra.gmra.mrb[0].mxu0 %vm218_vm2, %v213_v17 }
  0x21   : > { %592 = vmatmul.mubr.msk.f32.vlgmr.msra.gmra.mrb[0].mxu1 %vm218_vm2, %v295_v18 }
  0x8b   : > { %v385_v41 = vpop.permute.xlu1 %384 }
  0x8f   : > { %v415_v43 = vpop.permute.xlu1 %414 }
  0xf3   : > { %v288_v21 = vpop.f32.mrb[0].mxu0 }
  0xf4   : > { %v292_v22 = vadd.f32 %v288_v21, %v212_v19  ;;  %v582_v23 = vpop.f32.mrb[1].mxu0  ;;  %v370_v24 = vpop.f32.mrb[0].mxu1 }
  0xf5   : > { %v374_v25 = vadd.f32 %v370_v24, %v293_v20  ;;  %v593_v26 = vpop.f32.mrb[1].mxu1 }
  0xf6   : > { %628 = vtanh.f32 %v292_v22  ;;  %v553_v29 = vmul.f32 -1.442695, %v292_v22 }
  0xf7   : > { %630 = vtanh.f32 %v374_v25  ;;  %v554_v30 = vmul.f32 -1.442695, %v374_v25 }
  0xf8   : > { %632 = vpow2.f32 %v553_v29 }
  0xf9   : > { %634 = vpow2.f32 %v554_v30 }
 0x100   : > { %v629_v27 = vpop.eup %628 }
 0x101   : > { %389 = vrot.lane.b32.xlu0 %v629_v27, %s687_s22  ;;  %v631_v28 = vpop.eup %630 }
 0x102   : > { %v633_v31 = vpop.eup %632 }
 0x103   : > { %v379_v32 = vadd.f32 1.0, %v633_v31  ;;  %v635_v33 = vpop.eup %634 }
 0x104   : > { %v409_v34 = vadd.f32 1.0, %v635_v33 }
 0x105   : > { %419 = vrot.lane.b32.xlu0 %v631_v28, %s687_s22  ;;  %636 = vrcp.f32 %v379_v32 }
 0x106   : > { %638 = vrcp.f32 %v409_v34 }
 0x10f   : > { %v637_v35 = vpop.eup %636 }
 0x110   : > { %v639_v38 = vpop.eup %638  ;;  %v387_v42 = vmul.f32 %v637_v35, %v385_v41 }
 0x111   : > { %v417_v46 = vmul.f32 %v639_v38, %v415_v43 }
 0x173   : > { %v390_v36 = vpop.permute.xlu0 %389 }
 0x174   : > { %v392_v37 = vmul.f32 %v637_v35, %v390_v36 }
 0x176   : > { %394 = vrot.lane.b32.xlu0 %v392_v37, %s686_s21 }
 0x177   : > { %v420_v39 = vpop.permute.xlu0 %419 }
 0x178   : > { %v422_v40 = vmul.f32 %v639_v38, %v420_v39 }
 0x17a   : > { %424 = vrot.lane.b32.xlu1 %v422_v40, %s686_s21 }
 0x1e8   : > { %v395_v44 = vpop.permute.xlu0 %394 }
 0x1e9   : > { %v397_v45 = vadd.f32 %v395_v44, %v387_v42 }
 0x1eb   : > { %640 = vtanh.f32 %v397_v45 }
 0x1ec   : > { %v425_v47 = vpop.permute.xlu1 %424 }
 0x1ed   : > { %v427_v48 = vadd.f32 %v425_v47, %v417_v46 }
 0x1ef   : > { %642 = vtanh.f32 %v427_v48 }
 0x1f5   : > { %v641_v49 = vpop.eup %640 }
 0x1f6   : > { %400 = vrot.lane.b32.xlu0 %v641_v49, %s687_s22 }
 0x1f9   : > { %v643_v50 = vpop.eup %642 }
 0x1fa   : > { %430 = vrot.lane.b32.xlu1 %v643_v50, %s687_s22 }
 0x1fe   : > { %441 = vrot.lane.b32.xlu1 %v397_v45, %s688_s23 }
 0x202   : > { %451 = vrot.lane.b32.xlu1 %v427_v48, %s688_s23 }
 0x268   : > { %v401_v51 = vpop.permute.xlu0 %400 }
 0x269   : > { %v403_v52 = vmul.f32 %v637_v35, %v401_v51 }
 0x26b   : > { %435 = vrot.lane.b32.xlu0 %v403_v52, %s686_s21 }
 0x26c   : > { %v431_v53 = vpop.permute.xlu1 %430 }
 0x26d   : > { %v433_v54 = vmul.f32 %v639_v38, %v431_v53 }
 0x26f   : > { %446 = vrot.lane.b32.xlu0 %v433_v54, %s686_s21 }
 0x270   : > { %v442_v55 = vpop.permute.xlu1 %441 }
 0x271   : > { %444 = vst.msk [vmem:[#allocation3] sm:$0x3] %vm438_vm3, %v442_v55 }
 0x273   : > { %459 = vrot.lane.b32.xlu0 %v433_v54, %s687_s22 }
 0x274   : > { %v452_v56 = vpop.permute.xlu1 %451 }
 0x275   : > { %454 = vst.msk [vmem:[#allocation3 + $0x2] sm:$0x3] %vm438_vm3, %v452_v56 }
 0x2dd   : > { %v436_v57 = vpop.permute.xlu0 %435 }
 0x2de   : > { %439 = vst.msk [vmem:[#allocation2] sm:$0x3] %vm438_vm3, %v436_v57  ;;  %457 = vst.msk [vmem:[%s456_s27] sm:$0x3] %vm438_vm3, %v436_v57 }
 0x2df   : > { %470 = vst.msk [vmem:[#allocation4] sm:$0x3] (!%p557_p6), %vm438_vm3, %v436_v57 }
 0x2e0   : > { %469 = sbr.rel (%p557_p6) target bundleno = 743 (0x2e7), region = 40 }
 0x2e1   : > { %v447_v58 = vpop.permute.xlu0 %446 }
 0x2e2   : > { %449 = vst.msk [vmem:[#allocation2 + $0x2] sm:$0x3] %vm438_vm3, %v447_v58 }
 0x2e5   : > { %v460_v59 = vpop.permute.xlu0 %459 }
 0x2e6   : > { %465 = vst.msk [vmem:[%s463_s5] sm:$0x3] %vm464_vm4, %v460_v59  ;;  %471 = vst.msk [vmem:[#allocation4] sm:$0x3] (!%p557_p6), %vm464_vm4, %v460_v59 }
 0x2e7 PF: > { %p610_p7 = scmp.eq.s32.totalorder %s721_s16, 7  ;;  %s689_s17 = smov [#allocation4]  }
 0x2e8   : > { %s482_s6 = sshll.u32 %s689_s17, 4  ;;  %s483_s6 = int_to_ptr.vmem [resolvable:$true] %s482_s6 }
 0x2e9   : > { %s644_s7 = scalar_lea.vmem %s483_s6, 32  ;;  %p651_p11 = scmp.lt.s32.totalorder %s483_s6, %s483_s6 }
 0x2ea   : > { %p645_p8 = scmp.ne.s32.totalorder %s483_s6, %s644_s7  ;;  %p652_p12 = scmp.lt.s32.totalorder %s644_s7, %s644_s7 }
 0x2ec   : > { %p646_p9 = pnand %p645_p8, %p610_p7  ;;  %p653_p13 = por %p652_p12, %p651_p11 }
 0x2ee   : > { %p647_p10 = pneg %p646_p9 }
 0x2f0   : > { %p654_p0 = pnand %p653_p13, %p647_p10 }
 0x2f2   : > { %657 = shalt.err (!%p654_p0)
}
 0x2f3   : > { %s658_s10 = scalar_lea.hbm %s825_s4, 32 }
 0x2f4   : > { %p659_p1 = scmp.ne.s32.totalorder %s825_s4, %s658_s10  ;;  %p664_p4 = scmp.lt.u32.totalorder %s658_s10, %s825_s4 }
 0x2f6   : > { %p660_p2 = pnand %p659_p1, %p610_p7 }
 0x2f8   : > { %p661_p3 = pneg %p660_p2 }
 0x2fa   : > { %p666_p5 = pnand %p664_p4, %p661_p3 }
 0x2fc   : > { %669 = shalt.err (!%p666_p5)
}
 0x2fd   : > { %607 = dma.vmem_to_hbm [thread:$0]  (%p610_p7), %s483_s6, 32, %s825_s4, [#allocation5]  }
 0x2fe   : > { %675 = dma.done.wait (%p610_p7), [#allocation5], 32  }
 0x2ff   : > { %677 = vsyncadd (%p610_p7), [#allocation5], 4294967264 }
 0x300 PF: > { %s16_s15 = sadd.s32 1, %s680_s15  }
 0x301   : > { %p13_p6 = scmp.ge.s32.totalorder %s16_s15, 10  }
 0x303   :  { %15 = sbr.rel (!%p13_p6) target bundleno = 1 (0x1), region = 83 }
 0x30a   :  { %498 = vsyncpa [#allocation5], 1 }
 0x30b   :  { %500 = vsyncpa [#allocation5 + $0x1], 1 }

// kernel: rnn_forward.6
= control target key start
LH: loop header
LB: loop body
LE: loop exit
PB: predicated region body
PF: predicated region fallthrough
CT: control target
= control target key end

     0   :  { %v169_v3 = vmov 0.0   ;;  %vm46_vm0 = vcmask 523264   ;;  %v36_v27 = vlaneseq  ;;  %s264_s1 = inlined_call_operand.vmem [shape: f32[64,256], index: 1, kind: input, shape index: {}]   ;;  %s265_s0 = inlined_call_operand.vmem [shape: f32[16,64], index: 0, kind: input, shape index: {}]   ;;  %s266_s2 = inlined_call_operand.vmem [shape: f32[1,256], index: 2, kind: input, shape index: {}]   ;;  %s267_s3 = inlined_call_operand.vmem [shape: f32[16,128], index: 3, kind: output, shape index: {0}]   ;;  %s268_s4 = inlined_call_operand.vmem [shape: f32[16,128], index: 4, kind: output, shape index: {1}]  }
   0x1   :  { %v19_v0 = vld [vmem:[%s264_s1 + $0x8] sm:$0xff]  ;;  %v21_v1 = vld [vmem:[%s264_s1 + $0x18] sm:$0xff]  ;;  %v18_v2 = vld [vmem:[%s264_s1] sm:$0xff]  ;;  %117 = vmatprep.mubr.f32.mxu0 %v169_v3  ;;  %123 = vmatprep.mubr.f32.mxu1 %v169_v3 }
   0x2   :  { %v144_v4 = vpack.c.bf16 %v21_v1, %v19_v0  ;;  %v20_v5 = vld [vmem:[%s264_s1 + $0x10] sm:$0xff]  ;;  %v23_v6 = vld [vmem:[%s264_s1 + $0x28] sm:$0xff]  ;;  %v25_v7 = vld [vmem:[%s264_s1 + $0x38] sm:$0xff]  ;;  %v37_v28 = vshrl.u32 %v36_v27, 7 }
   0x3   :  { %v146_v8 = vpack.c.bf16 %v20_v5, %v18_v2  ;;  %v148_v9 = vpack.c.bf16 %v25_v7, %v23_v6  ;;  %v22_v10 = vld [vmem:[%s264_s1 + $0x20] sm:$0xff]  ;;  %v24_v11 = vld [vmem:[%s264_s1 + $0x30] sm:$0xff]  ;;  %v27_v12 = vld [vmem:[%s264_s1 + $0x48] sm:$0xff] }
   0x4   :  { %145 = vmatprep.subr.bf16.mxu0 %v144_v4  ;;  %160 = vmatprep.subr.bf16.mxu1 %v144_v4  ;;  %v29_v13 = vld [vmem:[%s264_s1 + $0x58] sm:$0xff]  ;;  %v150_v14 = vpack.c.bf16 %v24_v11, %v22_v10  ;;  %v26_v16 = vld [vmem:[%s264_s1 + $0x40] sm:$0xff]  ;;  %v28_v17 = vld [vmem:[%s264_s1 + $0x50] sm:$0xff]  ;;  %v38_v29 = vsub.s32 0, %v37_v28  ;;  %v42_v31 = vsub.s32 1, %v37_v28 }
   0x5   :  { %147 = vmatpush1.bf16.msra.mxu0 %v146_v8  ;;  %164 = vmatpush1.bf16.msra.mxu1 %v146_v8  ;;  %v152_v15 = vpack.c.bf16 %v29_v13, %v27_v12  ;;  %v31_v18 = vld [vmem:[%s264_s1 + $0x68] sm:$0xff]  ;;  %v33_v19 = vld [vmem:[%s264_s1 + $0x78] sm:$0xff]  ;;  %v154_v20 = vpack.c.bf16 %v28_v17, %v26_v16  ;;  %v30_v22 = vld [vmem:[%s264_s1 + $0x60] sm:$0xff] }
   0x6   :  { %149 = vmatprep.subr.bf16.mxu0 %v148_v9  ;;  %161 = vmatprep.subr.bf16.mxu1 %v148_v9  ;;  %v156_v21 = vpack.c.bf16 %v33_v19, %v31_v18  ;;  %v32_v23 = vld [vmem:[%s264_s1 + $0x70] sm:$0xff]  ;;  %v16_v25 = vld [vmem:[%s265_s0] sm:$0xff]  ;;  %v17_v26 = vld [vmem:[%s265_s0 + $0x8] sm:$0xff] }
   0x7   :  { %v158_v24 = vpack.c.bf16 %v32_v23, %v30_v22  ;;  %v34_v30 = vld [vmem:[%s266_s2] sm:$0x3] }
   0x8   :  { %v39_v32 = vrot.slane %v34_v30, %v38_v29  ;;  %v43_v33 = vrot.slane %v34_v30, %v42_v31 }
   0x9   :  { %151 = vmatpush1.bf16.msra.mxu0 %v150_v14  ;;  %165 = vmatpush1.bf16.msra.mxu1 %v150_v14 }
   0xa   :  { %153 = vmatprep.subr.bf16.mxu0 %v152_v15  ;;  %162 = vmatprep.subr.bf16.mxu1 %v152_v15 }
   0xd   :  { %155 = vmatpush1.bf16.msra.mxu0 %v154_v20  ;;  %166 = vmatpush1.bf16.msra.mxu1 %v154_v20 }
   0xe   :  { %157 = vmatprep.subr.bf16.mxu0 %v156_v21  ;;  %163 = vmatprep.subr.bf16.mxu1 %v156_v21 }
  0x11   :  { %159 = vmatpush1.bf16.msra.mxu0 %v158_v24  ;;  %167 = vmatpush1.bf16.msra.mxu1 %v158_v24 }
  0x14   :  { %142 = vmatmul.mubr.msk.f32.vlgmr.msra.gmra.mrb[0].mxu0 %vm46_vm0, %v16_v25  ;;  %143 = vmatmul.mubr.msk.f32.vlgmr.msra.gmra.mrb[0].mxu1 %vm46_vm0, %v17_v26 }
  0xe7   :  { %v119_v34 = vpop.f32.mrb[0].mxu0  ;;  %v125_v35 = vpop.f32.mrb[0].mxu1 }
  0xe8   :  { %v120_v36 = vadd.f32 %v119_v34, %v39_v32  ;;  %v126_v37 = vadd.f32 %v125_v35, %v39_v32  ;;  %v121_v38 = vpop.f32.mrb[1].mxu0  ;;  %v127_v39 = vpop.f32.mrb[1].mxu1 }
  0xe9   :  { %v122_v40 = vadd.f32 %v121_v38, %v43_v33  ;;  %v128_v41 = vadd.f32 %v127_v39, %v43_v33 }
  0xea   :  { %130 = vst [vmem:[%s267_s3] sm:$0xff] %v120_v36  ;;  %131 = vst [vmem:[%s267_s3 + $0x8] sm:$0xff] %v126_v37 }
  0xeb   :  { %132 = vst [vmem:[%s268_s4] sm:$0xff] %v122_v40  ;;  %133 = vst [vmem:[%s268_s4 + $0x8] sm:$0xff] %v128_v41 }

</bundles_post_ra>
